<compile_context>
chip_gen: v5e
topology: v5e:2x2
jax: 0.10.0
libtpu: 0.0.40
codegen_flags: <defaults>
</compile_context>

<pallas_src>
import math
import functools

import numpy as np
import jax
import jax.numpy as jnp
from jax import lax
from jax.experimental import pallas as pl
from jax.experimental.pallas import tpu as pltpu


def _upfirdn1d_matrix(n_in, kernel, up, down, pad0, pad1):
    """Dense operator M (n_in, n_out) with y = x @ M == 1-D upfirdn(x, kernel, up, down, pad)."""
    k = int(kernel.shape[0])
    n_up = n_in * up
    n_out = (n_up + pad0 + pad1 - k) // down + 1
    m = np.zeros((n_in, n_out), np.float32)
    for o in range(n_out):
        for t in range(k):
            j = o * down + t - pad0
            if j < 0 or j >= n_up or (j % up) != 0:
                continue
            m[j // up, o] += float(kernel[k - 1 - t])
    return m


def _pick_oc_block(oc, target=128):
    """Largest multiple-of-8 divisor of `oc` <= target (fills the MXU M dimension).
    v6e/v7x have 256-wide MXUs -> target 128; use oc_block=64 on v5e if VMEM-pressed."""
    if oc <= target:
        return oc
    for blk in range(target, 7, -1):
        if blk % 8 == 0 and oc % blk == 0:
            return blk
    return oc


def _vmem_cap_bytes(default=48 << 20):
    """Per-generation ceiling for vmem_limit_bytes (v7x has only 64 MiB physical VMEM)."""
    try:
        cap = int(getattr(pltpu.get_tpu_info(), "vmem_capacity_bytes", 0))
        if cap > 0:
            return min(cap * 3 // 4, 100 << 20)
    except Exception:
        pass
    return default


# ---------------- fused Pallas kernel ----------------

def _aliasfree_conv_kernel(s_ref, w_ref, b_ref, x_ref, mask_ref, up_ref, dn_ref,
                           out_ref, patch_ref, *, k, h, w, pad, negative_slope, inv_ema):
    """One (batch, OC-tile) grid step of modulated conv + alias-free activation.

    s_ref    : (1, KK*C)        style modulation, tiled per tap (f32)
    w_ref    : (OC_blk, KK*C)   scaled conv weight tile, tap-major columns (bf16)
    b_ref    : (OC_blk, 1)      activation bias, added pre-FIR (f32)
    x_ref    : (C, L)           flattened H-padded input (bf16)
    mask_ref : (K, H*W)         horizontal border mask per kx (bf16)
    up_ref   : (H*W, Hu*Wu)     fused 2-D upsample FIR operator (bf16)
    dn_ref   : (Hu*Wu, Hd*Wd)   fused 2-D downsample FIR operator * sqrt(2) (bf16)
    out_ref  : (OC_blk, Hd*Wd)  lane-dense flat output slab
    patch_ref: (KK*C, H*W)      VMEM scratch: im2col slab, built once per batch element
    """
    c = x_ref.shape[0]
    hw = h * w

    # ---- build im2col patches once per batch element; reused by every OC tile ----
    # (relies on the OC-tile axis being the innermost, "arbitrary" grid axis)
    @pl.when(pl.program_id(1) == 0)
    def _build_patches():
        mask = mask_ref[...].astype(jnp.float32)                         # (K, HW)
        for ky in range(k):
            # one base lane-window load per kernel row; kx taps derived via XLU roll
            base = x_ref[:, ky * w + pad:ky * w + pad + hw].astype(jnp.float32)
            for kx in range(k):
                t = ky * k + kx
                shift = (pad - kx) % hw
                tap = base if shift == 0 else pltpu.roll(base, shift, axis=1)
                # the roll's wrap-around lanes are exactly the mask==0 positions
                patch_ref[t * c:(t + 1) * c, :] = (
                    tap * mask[kx:kx + 1, :]).astype(jnp.bfloat16)

    # ---- style modulation + demodulation of the conv weight tile (f32 math) ----
    wmod = w_ref[...].astype(jnp.float32) * s_ref[...]                   # (OC_blk, KK*C)
    demod = lax.rsqrt(jnp.sum(wmod * wmod, axis=1, keepdims=True) + 1e-8)
    wmod = (wmod * (demod * inv_ema)).astype(jnp.bfloat16)
    # TODO(synk): training-mode ema_var running-average update omitted (eval: ema_var == 1).

    # ---- grouped KxK conv: one deep-contraction MXU matmul (depth K*K*C) ----
    cv = jnp.dot(wmod, patch_ref[...], preferred_element_type=jnp.float32)  # (OC_blk, HW)
    cv = cv + b_ref[...]                                                     # pre-FIR bias

    # ---- alias-free activation, fully flat / lane-dense:
    #      up x2 FIR -> leaky relu (sqrt(2) gain folded into dn operator) -> down x2 FIR
    y = jnp.dot(cv.astype(jnp.bfloat16), up_ref[...],
                preferred_element_type=jnp.float32)                         # (OC_blk, Hu*Wu)
    y = jnp.where(y >= 0.0, y, y * negative_slope)
    y = jnp.dot(y.astype(jnp.bfloat16), dn_ref[...],
                preferred_element_type=jnp.float32)                         # (OC_blk, Hd*Wd)
    out_ref[...] = y.astype(out_ref.dtype)


# ---------------- module wrapper ----------------

class AliasFreeConvPallas:
    def __init__(self, in_channel, out_channel, kernel_size, style_dim,
                 upsample_filter, downsample_filter, upsample=1, demodulate=True,
                 margin=10, oc_block=None, *, key):
        assert demodulate, "only demodulate=True is implemented"
        assert kernel_size % 2 == 1
        self.in_channel = in_channel
        self.out_channel = out_channel
        self.kernel_size = kernel_size
        self.style_dim = style_dim
        self.margin = margin

        k_w, k_mod = jax.random.split(key)

        # ModulatedConv2d parameters (deterministic init).
        self.conv_scale = 1.0 / math.sqrt(in_channel * kernel_size ** 2)
        self.weight = jax.random.normal(
            k_w, (1, out_channel, in_channel, kernel_size, kernel_size), jnp.float32)
        # EqualLinear(style_dim, in_channel, bias_init=1), lr_mul=1, no activation.
        self.mod_weight = jax.random.normal(k_mod, (in_channel, style_dim), jnp.float32)
        self.mod_scale = 1.0 / math.sqrt(style_dim)
        self.mod_bias = jnp.ones((in_channel,), jnp.float32)

        # AliasFreeActivation parameters / buffers (negative_slope=0.2, up=2*upsample, down=2).
        self.act_bias = jnp.zeros((out_channel,), jnp.float32)
        self.up = upsample * 2
        self.down = 2
        self.negative_slope = 0.2
        self.up_filter = np.asarray(upsample_filter, np.float32) * self.up
        self.down_filter = np.asarray(downsample_filter, np.float32)
        p = len(upsample_filter) - self.up
        self.up_pad = ((p + 1) // 2 + self.up - 1, p // 2)
        p = len(downsample_filter) - self.down
        self.down_pad = ((p + 1) // 2, p // 2)

        self.oc_block = oc_block if oc_block is not None else _pick_oc_block(out_channel)
        assert out_channel % self.oc_block == 0
        self._op_cache = {}    # per-(H, W) fused FIR operators / masks, built & device_put once

    def _operators(self, h, w):
        key = (h, w)
        if key not in self._op_cache:
            k = self.kernel_size
            pad = k // 2

            a_up_w = _upfirdn1d_matrix(w, self.up_filter, self.up, 1, *self.up_pad)   # (W, Wu)
            a_up_h = _upfirdn1d_matrix(h, self.up_filter, self.up, 1, *self.up_pad)   # (H, Hu)
            wu, hu = a_up_w.shape[1], a_up_h.shape[1]
            a_dn_w = _upfirdn1d_matrix(wu, self.down_filter, 1, self.down, *self.down_pad)
            a_dn_h = _upfirdn1d_matrix(hu, self.down_filter, 1, self.down, *self.down_pad)
            wd, hd = a_dn_w.shape[1], a_dn_h.shape[1]

            # Fused separable 2-D FIR operators on the flat (H*W)-on-lanes layout:
            #   y_flat = x_flat @ (A_h kron A_w).  sqrt(2) leaky-relu gain folded into dn.
            m_up = np.kron(a_up_h, a_up_w)                                  # (H*W, Hu*Wu)
            m_dn = np.kron(a_dn_h, a_dn_w) * math.sqrt(2.0)                 # (Hu*Wu, Hd*Wd)

            # Horizontal border mask for the wrap-around im2col trick (per kx, per pixel).
            col = np.arange(w)[None, :] + np.arange(k)[:, None] - pad       # (K, W)
            mask_w = ((col >= 0) & (col < w)).astype(np.float32)
            mask = np.tile(mask_w, (1, h))                                   # (K, H*W)

            def bf16(a):
                return jnp.asarray(np.ascontiguousarray(a), dtype=jnp.bfloat16)

            self._op_cache[key] = dict(mask=bf16(mask), up=bf16(m_up), dn=bf16(m_dn),
                                       dims=(hu, wu, hd, wd))
        return self._op_cache[key]

    def __call__(self, x, style):
        b, c, h, w = x.shape
        assert c == self.in_channel
        oc = self.out_channel
        k = self.kernel_size
        kk = k * k
        hw = h * w
        pad = k // 2
        oc_blk = self.oc_block
        n_oc = oc // oc_blk

        ops = self._operators(h, w)
        hu, wu, hd, wd = ops["dims"]
        hu_wu, hd_wd = hu * wu, hd * wd

        # ---- host-side glue (all 1x data, cheap) ----
        s = style @ (self.mod_weight.T * self.mod_scale) + self.mod_bias        # (B, C)
        s_tiled = jnp.tile(s, (1, kk)).reshape(b, 1, kk * c)                    # (B, 1, KK*C)
        w2 = (self.conv_scale
              * jnp.transpose(self.weight[0], (0, 2, 3, 1))).reshape(oc, kk * c)
        w2 = w2.astype(jnp.bfloat16)                                             # bf16 streaming
        bias_col = self.act_bias.reshape(oc, 1)

        # H-padded input, flattened with `pad` extra zeros on each end so every conv tap
        # becomes a pure lane offset (horizontal borders handled by the in-kernel mask).
        L = (h + 2 * pad) * w + 2 * pad
        xflat = jnp.pad(
            jnp.pad(x, ((0, 0), (0, 0), (pad, pad), (0, 0))).reshape(b, c, (h + 2 * pad) * w),
            ((0, 0), (0, 0), (pad, pad))).astype(jnp.bfloat16)                   # (B, C, L)

        # VMEM plan: double-buffered ins/outs + patch scratch + slack, clamped per generation.
        in_bytes = (kk * c * 4 + oc_blk * kk * c * 2 + oc_blk * 4 + c * L * 2
                    + k * hw * 2 + hw * hu_wu * 2 + hu_wu * hd_wd * 2)
        out_bytes = oc_blk * hd_wd * 4
        scratch_bytes = kk * c * hw * 2
        needed = 2 * (in_bytes + out_bytes) + scratch_bytes
        vmem_limit = int(min(max(needed + needed // 4 + (4 << 20), 16 << 20),
                             _vmem_cap_bytes()))

        kernel = functools.partial(
            _aliasfree_conv_kernel, k=k, h=h, w=w, pad=pad,
            negative_slope=self.negative_slope, inv_ema=1.0 / (math.sqrt(1.0) + 1e-8))

        out_flat = pl.pallas_call(
            kernel,
            out_shape=jax.ShapeDtypeStruct((b, oc, hd_wd), jnp.float32),
            grid=(b, n_oc),
            in_specs=[
                pl.BlockSpec((None, 1, kk * c), lambda i, j: (i, 0, 0)),     # style row
                pl.BlockSpec((oc_blk, kk * c), lambda i, j: (j, 0)),         # bf16 weight tile
                pl.BlockSpec((oc_blk, 1), lambda i, j: (j, 0)),              # activation bias
                pl.BlockSpec((None, c, L), lambda i, j: (i, 0, 0)),          # flat padded input
                pl.BlockSpec((k, hw), lambda i, j: (0, 0)),                  # border masks
                pl.BlockSpec((hw, hu_wu), lambda i, j: (0, 0)),              # fused up FIR op
                pl.BlockSpec((hu_wu, hd_wd), lambda i, j: (0, 0)),           # fused down FIR op
            ],
            out_specs=pl.BlockSpec((None, oc_blk, hd_wd), lambda i, j: (i, j, 0)),
            scratch_shapes=[pltpu.VMEM((kk * c, hw), jnp.bfloat16)],
            compiler_params=pltpu.CompilerParams(
                dimension_semantics=("parallel", "arbitrary"),
                vmem_limit_bytes=vmem_limit),
        )(s_tiled, w2, bias_col, xflat, ops["mask"], ops["up"], ops["dn"])

        out = out_flat.reshape(b, oc, hd, wd)

        # margin crop (glue; m == 0 when upsample == 1)
        m = (self.margin * self.up - self.margin * self.down) // 2
        if m > 0:
            out = out[:, :, m:-m, m:-m]
        return out


# ---------------- pure-JAX reference (for validation) ----------------

def reference_forward(module, x, style):
    b, c, h, w = x.shape
    k = module.kernel_size
    s = style @ (module.mod_weight.T * module.mod_scale) + module.mod_bias      # (B, C)
    wgt = module.conv_scale * module.weight[0]                                   # (OC, C, K, K)
    wgt = wgt[None] * s[:, None, :, None, None]                                  # (B, OC, C, K, K)
    demod = lax.rsqrt(jnp.sum(wgt * wgt, axis=(2, 3, 4)) + 1e-8)
    wgt = wgt * demod[:, :, None, None, None]
    wgt = wgt / (math.sqrt(1.0) + 1e-8)
    pad = k // 2
    outs = [lax.conv_general_dilated(x[i:i + 1], wgt[i], (1, 1),
                                     [(pad, pad), (pad, pad)],
                                     dimension_numbers=("NCHW", "OIHW", "NCHW"),
                                     precision=lax.Precision.HIGHEST)
            for i in range(b)]
    out = jnp.concatenate(outs, axis=0) + module.act_bias.reshape(1, -1, 1, 1)

    a_up_w = jnp.asarray(_upfirdn1d_matrix(w, module.up_filter, module.up, 1, *module.up_pad))
    a_up_h = jnp.asarray(_upfirdn1d_matrix(h, module.up_filter, module.up, 1, *module.up_pad))
    a_dn_w = jnp.asarray(_upfirdn1d_matrix(a_up_w.shape[1], module.down_filter, 1,
                                           module.down, *module.down_pad))
    a_dn_h = jnp.asarray(_upfirdn1d_matrix(a_up_h.shape[1], module.down_filter, 1,
                                           module.down, *module.down_pad))
    y = jnp.einsum("bchw,wu->bchu", out, a_up_w, precision=lax.Precision.HIGHEST)
    y = jnp.einsum("bchu,hv->bcvu", y, a_up_h, precision=lax.Precision.HIGHEST)
    y = jnp.where(y >= 0.0, y, 0.2 * y) * (2.0 ** 0.5)
    y = jnp.einsum("bcvu,ud->bcvd", y, a_dn_w, precision=lax.Precision.HIGHEST)
    y = jnp.einsum("bcvd,ve->bced", y, a_dn_h, precision=lax.Precision.HIGHEST)
    m = (module.margin * module.up - module.margin * module.down) // 2
    if m > 0:
        y = y[:, :, m:-m, m:-m]
    return y


if __name__ == "__main__":
    key = jax.random.PRNGKey(0)
    k_params, k_x, k_style = jax.random.split(key, 3)

    batch, in_ch, out_ch, ksize, style_dim, spatial = 2, 8, 16, 3, 8, 16
    fir = np.array([1.0, 3.0, 3.0, 1.0], np.float32)
    fir = fir / fir.sum()

    # oc_block=8 -> grid (batch=2, oc_tiles=2): exercises OC tiling + the hoisted patch scratch.
    module = AliasFreeConvPallas(in_ch, out_ch, ksize, style_dim,
                                 upsample_filter=fir, downsample_filter=fir,
                                 upsample=1, demodulate=True, margin=10, oc_block=8,
                                 key=k_params)

    x = jax.random.normal(k_x, (batch, in_ch, spatial, spatial), jnp.float32)
    style = jax.random.normal(k_style, (batch, style_dim), jnp.float32)

    out = jax.block_until_ready(module(x, style))

    ref = jax.block_until_ready(reference_forward(module, x, style))
    assert out.shape == ref.shape, (out.shape, ref.shape)
    # Tolerance sized for bf16 MXU operands with f32 accumulation (reference is full f32).
    np.testing.assert_allclose(np.asarray(out), np.asarray(ref), atol=3e-2, rtol=3e-2)

    print("KERNEL_OK")
</pallas_src>

<mosaic_0001>
module attributes {stable_mosaic.version = 11 : i64} {
  func.func @_aliasfree_conv_kernel(%arg0: i32, %arg1: i32, %arg2: memref<1x1x72xf32, #tpu.memory_space<vmem>>, %arg3: memref<8x72xbf16, #tpu.memory_space<vmem>>, %arg4: memref<8x1xf32, #tpu.memory_space<vmem>>, %arg5: memref<1x8x290xbf16, #tpu.memory_space<vmem>>, %arg6: memref<3x256xbf16, #tpu.memory_space<vmem>>, %arg7: memref<256x1024xbf16, #tpu.memory_space<vmem>>, %arg8: memref<1024x256xbf16, #tpu.memory_space<vmem>>, %arg9: memref<1x8x256xf32, #tpu.memory_space<vmem>>, %arg10: memref<72x256xbf16, #tpu.memory_space<vmem>>) attributes {dimension_semantics = [#tpu.dimension_semantics<parallel>, #tpu.dimension_semantics<arbitrary>], iteration_bounds = array<i64: 2, 2>, scalar_prefetch = 0 : i64, scratch_operands = 1 : i64, tpu.core_type = #tpu.core_type<tc>, window_params = [{transform_indices = @transform_0, window_bounds = array<i64: 1, 1, 72>}, {transform_indices = @transform_1, window_bounds = array<i64: 8, 72>}, {transform_indices = @transform_2, window_bounds = array<i64: 8, 1>}, {transform_indices = @transform_3, window_bounds = array<i64: 1, 8, 290>}, {pipeline_mode = #tpu.pipeline_mode<synchronous>, transform_indices = @transform_4, window_bounds = array<i64: 3, 256>}, {pipeline_mode = #tpu.pipeline_mode<synchronous>, transform_indices = @transform_5, window_bounds = array<i64: 256, 1024>}, {pipeline_mode = #tpu.pipeline_mode<synchronous>, transform_indices = @transform_6, window_bounds = array<i64: 1024, 256>}, {transform_indices = @transform_7, window_bounds = array<i64: 1, 8, 256>}]} {
    %c0_i32 = arith.constant 0 : i32
    %0 = arith.cmpi eq, %arg1, %c0_i32 : i32
    %1 = arith.extui %0 : i1 to i32
    %c0_i32_0 = arith.constant 0 : i32
    %2 = arith.cmpi ne, %1, %c0_i32_0 : i32
    scf.if %2 {
      %c0_23 = arith.constant 0 : index
      %c0_24 = arith.constant 0 : index
      %39 = vector.load %arg6[%c0_23, %c0_24] : memref<3x256xbf16, #tpu.memory_space<vmem>>, vector<3x256xbf16>
      %40 = arith.extf %39 : vector<3x256xbf16> to vector<3x256xf32>
      %c0_25 = arith.constant 0 : index
      %c0_26 = arith.constant 0 : index
      %c1 = arith.constant 1 : index
      %41 = vector.load %arg5[%c0_25, %c0_26, %c1] : memref<1x8x290xbf16, #tpu.memory_space<vmem>>, vector<1x8x256xbf16>
      %42 = vector.shape_cast %41 : vector<1x8x256xbf16> to vector<8x256xbf16>
      %43 = arith.extf %42 : vector<8x256xbf16> to vector<8x256xf32>
      %c1_i32 = arith.constant 1 : i32
      %44 = tpu.dynamic_rotate %43 by %c1_i32 dim 1 : vector<8x256xf32>, i32 -> vector<8x256xf32>
      %45 = vector.extract_strided_slice %40 {offsets = [0, 0], sizes = [1, 256], strides = [1, 1]} : vector<3x256xf32> to vector<1x256xf32>
      %46 = vector.broadcast %45 : vector<1x256xf32> to vector<8x256xf32>
      %47 = arith.mulf %44, %46 : vector<8x256xf32>
      %48 = arith.truncf %47 : vector<8x256xf32> to vector<8x256xbf16>
      %c0_27 = arith.constant 0 : index
      %c0_28 = arith.constant 0 : index
      %49 = vector.load %arg10[%c0_27, %c0_28] : memref<72x256xbf16, #tpu.memory_space<vmem>>, vector<8x256xbf16>
      tpu.vector_store %arg10[%c0_27, %c0_28], %48 {strides = array<i32>} : memref<72x256xbf16, #tpu.memory_space<vmem>>, vector<8x256xbf16>,
      %50 = vector.extract_strided_slice %40 {offsets = [1, 0], sizes = [1, 256], strides = [1, 1]} : vector<3x256xf32> to vector<1x256xf32>
      %51 = vector.broadcast %50 : vector<1x256xf32> to vector<8x256xf32>
      %52 = arith.mulf %43, %51 : vector<8x256xf32>
      %53 = arith.truncf %52 : vector<8x256xf32> to vector<8x256xbf16>
      %c8 = arith.constant 8 : index
      %c0_29 = arith.constant 0 : index
      %54 = vector.load %arg10[%c8, %c0_29] : memref<72x256xbf16, #tpu.memory_space<vmem>>, vector<8x256xbf16>
      tpu.vector_store %arg10[%c8, %c0_29], %53 {strides = array<i32>} : memref<72x256xbf16, #tpu.memory_space<vmem>>, vector<8x256xbf16>,
      %c255_i32 = arith.constant 255 : i32
      %55 = tpu.dynamic_rotate %43 by %c255_i32 dim 1 : vector<8x256xf32>, i32 -> vector<8x256xf32>
      %56 = vector.extract_strided_slice %40 {offsets = [2, 0], sizes = [1, 256], strides = [1, 1]} : vector<3x256xf32> to vector<1x256xf32>
      %57 = vector.broadcast %56 : vector<1x256xf32> to vector<8x256xf32>
      %58 = arith.mulf %55, %57 : vector<8x256xf32>
      %59 = arith.truncf %58 : vector<8x256xf32> to vector<8x256xbf16>
      %c16 = arith.constant 16 : index
      %c0_30 = arith.constant 0 : index
      %60 = vector.load %arg10[%c16, %c0_30] : memref<72x256xbf16, #tpu.memory_space<vmem>>, vector<8x256xbf16>
      tpu.vector_store %arg10[%c16, %c0_30], %59 {strides = array<i32>} : memref<72x256xbf16, #tpu.memory_space<vmem>>, vector<8x256xbf16>,
      %c0_31 = arith.constant 0 : index
      %c0_32 = arith.constant 0 : index
      %c17 = arith.constant 17 : index
      %61 = vector.load %arg5[%c0_31, %c0_32, %c17] : memref<1x8x290xbf16, #tpu.memory_space<vmem>>, vector<1x8x256xbf16>
      %62 = vector.shape_cast %61 : vector<1x8x256xbf16> to vector<8x256xbf16>
      %63 = arith.extf %62 : vector<8x256xbf16> to vector<8x256xf32>
      %c1_i32_33 = arith.constant 1 : i32
      %64 = tpu.dynamic_rotate %63 by %c1_i32_33 dim 1 : vector<8x256xf32>, i32 -> vector<8x256xf32>
      %65 = vector.extract_strided_slice %40 {offsets = [0, 0], sizes = [1, 256], strides = [1, 1]} : vector<3x256xf32> to vector<1x256xf32>
      %66 = vector.broadcast %65 : vector<1x256xf32> to vector<8x256xf32>
      %67 = arith.mulf %64, %66 : vector<8x256xf32>
      %68 = arith.truncf %67 : vector<8x256xf32> to vector<8x256xbf16>
      %c24 = arith.constant 24 : index
      %c0_34 = arith.constant 0 : index
      %69 = vector.load %arg10[%c24, %c0_34] : memref<72x256xbf16, #tpu.memory_space<vmem>>, vector<8x256xbf16>
      tpu.vector_store %arg10[%c24, %c0_34], %68 {strides = array<i32>} : memref<72x256xbf16, #tpu.memory_space<vmem>>, vector<8x256xbf16>,
      %70 = vector.extract_strided_slice %40 {offsets = [1, 0], sizes = [1, 256], strides = [1, 1]} : vector<3x256xf32> to vector<1x256xf32>
      %71 = vector.broadcast %70 : vector<1x256xf32> to vector<8x256xf32>
      %72 = arith.mulf %63, %71 : vector<8x256xf32>
      %73 = arith.truncf %72 : vector<8x256xf32> to vector<8x256xbf16>
      %c32 = arith.constant 32 : index
      %c0_35 = arith.constant 0 : index
      %74 = vector.load %arg10[%c32, %c0_35] : memref<72x256xbf16, #tpu.memory_space<vmem>>, vector<8x256xbf16>
      tpu.vector_store %arg10[%c32, %c0_35], %73 {strides = array<i32>} : memref<72x256xbf16, #tpu.memory_space<vmem>>, vector<8x256xbf16>,
      %c255_i32_36 = arith.constant 255 : i32
      %75 = tpu.dynamic_rotate %63 by %c255_i32_36 dim 1 : vector<8x256xf32>, i32 -> vector<8x256xf32>
      %76 = vector.extract_strided_slice %40 {offsets = [2, 0], sizes = [1, 256], strides = [1, 1]} : vector<3x256xf32> to vector<1x256xf32>
      %77 = vector.broadcast %76 : vector<1x256xf32> to vector<8x256xf32>
      %78 = arith.mulf %75, %77 : vector<8x256xf32>
      %79 = arith.truncf %78 : vector<8x256xf32> to vector<8x256xbf16>
      %c40 = arith.constant 40 : index
      %c0_37 = arith.constant 0 : index
      %80 = vector.load %arg10[%c40, %c0_37] : memref<72x256xbf16, #tpu.memory_space<vmem>>, vector<8x256xbf16>
      tpu.vector_store %arg10[%c40, %c0_37], %79 {strides = array<i32>} : memref<72x256xbf16, #tpu.memory_space<vmem>>, vector<8x256xbf16>,
      %c0_38 = arith.constant 0 : index
      %c0_39 = arith.constant 0 : index
      %c33 = arith.constant 33 : index
      %81 = vector.load %arg5[%c0_38, %c0_39, %c33] : memref<1x8x290xbf16, #tpu.memory_space<vmem>>, vector<1x8x256xbf16>
      %82 = vector.shape_cast %81 : vector<1x8x256xbf16> to vector<8x256xbf16>
      %83 = arith.extf %82 : vector<8x256xbf16> to vector<8x256xf32>
      %c1_i32_40 = arith.constant 1 : i32
      %84 = tpu.dynamic_rotate %83 by %c1_i32_40 dim 1 : vector<8x256xf32>, i32 -> vector<8x256xf32>
      %85 = vector.extract_strided_slice %40 {offsets = [0, 0], sizes = [1, 256], strides = [1, 1]} : vector<3x256xf32> to vector<1x256xf32>
      %86 = vector.broadcast %85 : vector<1x256xf32> to vector<8x256xf32>
      %87 = arith.mulf %84, %86 : vector<8x256xf32>
      %88 = arith.truncf %87 : vector<8x256xf32> to vector<8x256xbf16>
      %c48 = arith.constant 48 : index
      %c0_41 = arith.constant 0 : index
      %89 = vector.load %arg10[%c48, %c0_41] : memref<72x256xbf16, #tpu.memory_space<vmem>>, vector<8x256xbf16>
      tpu.vector_store %arg10[%c48, %c0_41], %88 {strides = array<i32>} : memref<72x256xbf16, #tpu.memory_space<vmem>>, vector<8x256xbf16>,
      %90 = vector.extract_strided_slice %40 {offsets = [1, 0], sizes = [1, 256], strides = [1, 1]} : vector<3x256xf32> to vector<1x256xf32>
      %91 = vector.broadcast %90 : vector<1x256xf32> to vector<8x256xf32>
      %92 = arith.mulf %83, %91 : vector<8x256xf32>
      %93 = arith.truncf %92 : vector<8x256xf32> to vector<8x256xbf16>
      %c56 = arith.constant 56 : index
      %c0_42 = arith.constant 0 : index
      %94 = vector.load %arg10[%c56, %c0_42] : memref<72x256xbf16, #tpu.memory_space<vmem>>, vector<8x256xbf16>
      tpu.vector_store %arg10[%c56, %c0_42], %93 {strides = array<i32>} : memref<72x256xbf16, #tpu.memory_space<vmem>>, vector<8x256xbf16>,
      %c255_i32_43 = arith.constant 255 : i32
      %95 = tpu.dynamic_rotate %83 by %c255_i32_43 dim 1 : vector<8x256xf32>, i32 -> vector<8x256xf32>
      %96 = vector.extract_strided_slice %40 {offsets = [2, 0], sizes = [1, 256], strides = [1, 1]} : vector<3x256xf32> to vector<1x256xf32>
      %97 = vector.broadcast %96 : vector<1x256xf32> to vector<8x256xf32>
      %98 = arith.mulf %95, %97 : vector<8x256xf32>
      %99 = arith.truncf %98 : vector<8x256xf32> to vector<8x256xbf16>
      %c64 = arith.constant 64 : index
      %c0_44 = arith.constant 0 : index
      %100 = vector.load %arg10[%c64, %c0_44] : memref<72x256xbf16, #tpu.memory_space<vmem>>, vector<8x256xbf16>
      tpu.vector_store %arg10[%c64, %c0_44], %99 {strides = array<i32>} : memref<72x256xbf16, #tpu.memory_space<vmem>>, vector<8x256xbf16>,
    } else {
    }
    %c0 = arith.constant 0 : index
    %c0_1 = arith.constant 0 : index
    %3 = vector.load %arg3[%c0, %c0_1] : memref<8x72xbf16, #tpu.memory_space<vmem>>, vector<8x72xbf16>
    %4 = arith.extf %3 : vector<8x72xbf16> to vector<8x72xf32>
    %c0_2 = arith.constant 0 : index
    %c0_3 = arith.constant 0 : index
    %c0_4 = arith.constant 0 : index
    %5 = vector.load %arg2[%c0_2, %c0_3, %c0_4] : memref<1x1x72xf32, #tpu.memory_space<vmem>>, vector<1x1x72xf32>
    %6 = vector.shape_cast %5 : vector<1x1x72xf32> to vector<1x72xf32>
    %7 = vector.broadcast %6 : vector<1x72xf32> to vector<8x72xf32>
    %8 = arith.mulf %4, %7 : vector<8x72xf32>
    %9 = arith.mulf %8, %8 : vector<8x72xf32>
    %cst = arith.constant dense<0.000000e+00> : vector<8xf32>
    %10 = vector.multi_reduction <add>, %9, %cst [1] : vector<8x72xf32> to vector<8xf32>
    %11 = vector.shape_cast %10 : vector<8xf32> to vector<8x1xf32>
    %cst_5 = arith.constant 9.99999993E-9 : f32
    %12 = vector.broadcast %cst_5 : f32 to vector<8x1xf32>
    %13 = arith.addf %11, %12 : vector<8x1xf32>
    %14 = math.rsqrt %13 : vector<8x1xf32>
    %cst_6 = arith.constant 1.000000e+00 : f32
    %15 = vector.broadcast %cst_6 : f32 to vector<8x1xf32>
    %16 = arith.mulf %14, %15 : vector<8x1xf32>
    %17 = vector.broadcast %16 : vector<8x1xf32> to vector<8x72xf32>
    %18 = arith.mulf %8, %17 : vector<8x72xf32>
    %19 = arith.truncf %18 : vector<8x72xf32> to vector<8x72xbf16>
    %c0_7 = arith.constant 0 : index
    %c0_8 = arith.constant 0 : index
    %20 = vector.load %arg10[%c0_7, %c0_8] : memref<72x256xbf16, #tpu.memory_space<vmem>>, vector<72x256xbf16>
    %cst_9 = arith.constant dense<0.000000e+00> : vector<8x256xf32>
    %21 = tpu.matmul %19, %20, %cst_9 {dimension_numbers = #tpu.dot_dimension_numbers<[1], [0], [0], [1], [0, 0, 1, 1], [], []>} : vector<8x72xbf16>, vector<72x256xbf16>, vector<8x256xf32> -> vector<8x256xf32>
    %c0_10 = arith.constant 0 : index
    %c0_11 = arith.constant 0 : index
    %22 = vector.load %arg4[%c0_10, %c0_11] : memref<8x1xf32, #tpu.memory_space<vmem>>, vector<8x1xf32>
    %23 = vector.broadcast %22 : vector<8x1xf32> to vector<8x256xf32>
    %24 = arith.addf %21, %23 : vector<8x256xf32>
    %25 = arith.truncf %24 : vector<8x256xf32> to vector<8x256xbf16>
    %c0_12 = arith.constant 0 : index
    %c0_13 = arith.constant 0 : index
    %26 = vector.load %arg7[%c0_12, %c0_13] : memref<256x1024xbf16, #tpu.memory_space<vmem>>, vector<256x1024xbf16>
    %cst_14 = arith.constant dense<0.000000e+00> : vector<8x1024xf32>
    %27 = tpu.matmul %25, %26, %cst_14 {dimension_numbers = #tpu.dot_dimension_numbers<[1], [0], [0], [1], [0, 0, 1, 1], [], []>} : vector<8x256xbf16>, vector<256x1024xbf16>, vector<8x1024xf32> -> vector<8x1024xf32>
    %cst_15 = arith.constant 0.000000e+00 : f32
    %28 = vector.broadcast %cst_15 : f32 to vector<8x1024xf32>
    %29 = arith.cmpf oge, %27, %28 : vector<8x1024xf32>
    %cst_16 = arith.constant 2.000000e-01 : f32
    %30 = vector.broadcast %cst_16 : f32 to vector<8x1024xf32>
    %31 = arith.mulf %27, %30 : vector<8x1024xf32>
    %32 = arith.select %29, %27, %31 : vector<8x1024xi1>, vector<8x1024xf32>
    %33 = arith.truncf %32 : vector<8x1024xf32> to vector<8x1024xbf16>
    %c0_17 = arith.constant 0 : index
    %c0_18 = arith.constant 0 : index
    %34 = vector.load %arg8[%c0_17, %c0_18] : memref<1024x256xbf16, #tpu.memory_space<vmem>>, vector<1024x256xbf16>
    %cst_19 = arith.constant dense<0.000000e+00> : vector<8x256xf32>
    %35 = tpu.matmul %33, %34, %cst_19 {dimension_numbers = #tpu.dot_dimension_numbers<[1], [0], [0], [1], [0, 0, 1, 1], [], []>} : vector<8x1024xbf16>, vector<1024x256xbf16>, vector<8x256xf32> -> vector<8x256xf32>
    %c0_20 = arith.constant 0 : index
    %c0_21 = arith.constant 0 : index
    %c0_22 = arith.constant 0 : index
    %36 = vector.load %arg9[%c0_20, %c0_21, %c0_22] : memref<1x8x256xf32, #tpu.memory_space<vmem>>, vector<1x8x256xf32>
    %37 = vector.shape_cast %36 : vector<1x8x256xf32> to vector<8x256xf32>
    %38 = vector.shape_cast %35 : vector<8x256xf32> to vector<1x8x256xf32>
    tpu.vector_store %arg9[%c0_20, %c0_21, %c0_22], %38 {strides = array<i32>} : memref<1x8x256xf32, #tpu.memory_space<vmem>>, vector<1x8x256xf32>,
    return
  }
  func.func @transform_0(%arg0: i32, %arg1: i32) -> (i32, i32, i32) {
    %c0_i32 = arith.constant 0 : i32
    %c0_i32_0 = arith.constant 0 : i32
    %c0_i32_1 = arith.constant 0 : i32
    return %arg0, %c0_i32, %c0_i32_0 : i32, i32, i32
  }
  func.func @transform_1(%arg0: i32, %arg1: i32) -> (i32, i32) {
    %c0_i32 = arith.constant 0 : i32
    %c0_i32_0 = arith.constant 0 : i32
    return %arg1, %c0_i32 : i32, i32
  }
  func.func @transform_2(%arg0: i32, %arg1: i32) -> (i32, i32) {
    %c0_i32 = arith.constant 0 : i32
    %c0_i32_0 = arith.constant 0 : i32
    return %arg1, %c0_i32 : i32, i32
  }
  func.func @transform_3(%arg0: i32, %arg1: i32) -> (i32, i32, i32) {
    %c0_i32 = arith.constant 0 : i32
    %c0_i32_0 = arith.constant 0 : i32
    %c0_i32_1 = arith.constant 0 : i32
    return %arg0, %c0_i32, %c0_i32_0 : i32, i32, i32
  }
  func.func @transform_4(%arg0: i32, %arg1: i32) -> (i32, i32) {
    %c0_i32 = arith.constant 0 : i32
    %c0_i32_0 = arith.constant 0 : i32
    %c0_i32_1 = arith.constant 0 : i32
    return %c0_i32, %c0_i32_0 : i32, i32
  }
  func.func @transform_5(%arg0: i32, %arg1: i32) -> (i32, i32) {
    %c0_i32 = arith.constant 0 : i32
    %c0_i32_0 = arith.constant 0 : i32
    %c0_i32_1 = arith.constant 0 : i32
    return %c0_i32, %c0_i32_0 : i32, i32
  }
  func.func @transform_6(%arg0: i32, %arg1: i32) -> (i32, i32) {
    %c0_i32 = arith.constant 0 : i32
    %c0_i32_0 = arith.constant 0 : i32
    %c0_i32_1 = arith.constant 0 : i32
    return %c0_i32, %c0_i32_0 : i32, i32
  }
  func.func @transform_7(%arg0: i32, %arg1: i32) -> (i32, i32, i32) {
    %c0_i32 = arith.constant 0 : i32
    %c0_i32_0 = arith.constant 0 : i32
    return %arg0, %arg1, %c0_i32 : i32, i32, i32
  }
}

</mosaic_0001>

<bundles_post_ra>
// kernel: tpu_custom_call.1
= control target key start
LH: loop header
LB: loop body
LE: loop exit
PB: predicated region body
PF: predicated region fallthrough
CT: control target
= control target key end

     0   :  { %s5132_s0 = inlined_call_operand.vmem [shape: f32[2,1,72], index: 0, kind: input, shape index: {}]   ;;  %s5133_s1 = inlined_call_operand.vmem [shape: bf16[16,72], index: 1, kind: input, shape index: {}]   ;;  %s5134_s2 = inlined_call_operand.vmem [shape: f32[16,1], index: 2, kind: input, shape index: {}]   ;;  %s5135_s3 = inlined_call_operand.hbm [shape: bf16[2,8,290], index: 3, kind: input, shape index: {}]   ;;  %s5136_s4 = inlined_call_operand.vmem [shape: bf16[3,256], index: 4, kind: input, shape index: {}]   ;;  %s5137_s5 = inlined_call_operand.hbm [shape: bf16[256,1024], index: 5, kind: input, shape index: {}]   ;;  %s5138_s6 = inlined_call_operand.hbm [shape: bf16[1024,256], index: 6, kind: input, shape index: {}]   ;;  %s5139_s7 = inlined_call_operand.hbm [shape: f32[2,16,256], index: 7, kind: output, shape index: {}]  }
   0x1   :  { %5148 = sst [smem:[#allocation19_spill]] %s5134_s2 }
   0x2   :  { %5149 = sst [smem:[#allocation20_spill]] %s5136_s4 }
   0x3   :  { %5150 = sst [smem:[#allocation21_spill]] %s5137_s5 }
   0x4   :  { %5151 = sst [smem:[#allocation22_spill]] %s5138_s6 }
   0x5   :  { %5152 = sst [smem:[#allocation23_spill]] %s5139_s7 }
   0x6   :  { %12 = vsyncpa [#allocation4], 0 }
   0x7   :  { %14 = vsyncpa [#allocation4 + $0x1], 0 }
   0x8   :  { %15 = vsyncpa [#allocation7], 0 }
   0x9   :  { %16 = vsyncpa [#allocation5], 0 }
   0xa   :  { %18 = vsyncpa [#allocation5 + $0x1], 0  ;;  %s4701_s24 = smov 0   ;;  %s4703_s25 = smov 0  }
   0xb   :  { %s4705_s26 = smov 0   ;;  %s4707_s27 = smov 0  }
   0xc   :  { %s4709_s28 = smov 0   ;;  %s4711_s29 = smov 0  }
   0xd   :  { %s4713_s30 = smov 0   ;;  %s4715_s8 = smov 0  }
   0xe   :  { %s4717_s9 = smov 0   ;;  %s4719_s10 = smov 0  }
   0xf   :  { %s4721_s11 = smov 0  }
  0x10 LB: > { %5153 = sst [smem:[#allocation13_spill]] %s4606_s24  ;;  %s2887_s12 = sadd.s32 4294967295, %s4646_s11   ;;  %s4646_s11 = sphi %s4721_s11, %s24_s11   ;;  %s4642_s10 = sphi %s4719_s10, %s5185_s10   ;;  %s4638_s9 = sphi %s4717_s9, %s5176_s9   ;;  %s4634_s8 = sphi %s4715_s8, %s5184_s8   ;;  %s4630_s30 = sphi %s4713_s30, %s5175_s30   ;;  %s4626_s29 = sphi %s4711_s29, %s5183_s29   ;;  %s4622_s28 = sphi %s4709_s28, %s5182_s28   ;;  %s4618_s27 = sphi %s4707_s27, %s5181_s27   ;;  %s4614_s26 = sphi %s4705_s26, %s5180_s26   ;;  %s4610_s25 = sphi %s4703_s25, %s5179_s25   ;;  %s4606_s24 = sphi %s4701_s24, %s5178_s24  }
  0x11   : > { %5154 = sst [smem:[#allocation14_spill]] %s4638_s9  ;;  %s2888_s13 = sadd.s32 4294967294, %s4646_s11  }
  0x12   : > { %p4758_p0 = scmp.eq.s32.totalorder %s2887_s12, 0  ;;  %p222_p1 = scmp.ne.s32.totalorder %s4614_s26, %s4610_s25 }
  0x13   : > { %p223_p2 = scmp.eq.s32.totalorder %s2887_s12, 3  ;;  %p228_p3 = scmp.ne.s32.totalorder %s4610_s25, %s4606_s24 }
  0x14   : > { %p229_p4 = scmp.eq.s32.totalorder %s2888_s13, 3  ;;  %p2889_p5 = scmp.ge.s32.totalorder %s4646_s11, 1 }
  0x15   : > { %p4767_p6 = por %p223_p2, %p222_p1  ;;  %p236_p7 = scmp.lt.s32.totalorder %s4646_s11, 5 }
  0x16   : > { %p4772_p8 = por %p229_p4, %p228_p3  ;;  %s5161_s5 = sld [smem:[#allocation21_spill]] }
  0x17   : > { %s5156_s15 = scalar_select %p4767_p6, 1, 0 }
  0x18   : > { %s5158_s16 = scalar_select %p4772_p8, 1, 0 }
  0x19   : > { %5157 = sst [smem:[#allocation15_spill]] %s5156_s15  ;;  %p4776_p9 = pnand %p2889_p5, %p236_p7 }
  0x1a   : > { %5159 = sst [smem:[#allocation16_spill]] %s5158_s16  ;;  %s4648_s21 = smov [#allocation6]  }
  0x1b   : > { %p4244_p10 = pneg %p4776_p9  ;;  %s252_s22 = sshll.u32 %s4648_s21, 4  ;;  %s253_s22 = int_to_ptr.vmem [resolvable:$true] %s252_s22 }
  0x1c   : > { %s250_s20 = sshll.u32 %s5161_s5, 4  ;;  %s5162_s6 = sld [smem:[#allocation22_spill]]  ;;  %s251_s20 = int_to_ptr.hbm [resolvable:$true] %s250_s20 }
  0x1d   : > { %p4245_p11 = pnand %p4244_p10, %p4758_p0  ;;  %s4649_s18 = smov 512  }
  0x1e   : > { %s4650_s19 = smov 32   ;;  %s4651_s21 = smov [#allocation8]  }
  0x1f   : > { %4247 = dma.hbm_to_vmem [thread:$0]  (!%p4245_p11), %s251_s20, 16384, %s253_s22, [#allocation7], %s4649_s18, %s4649_s18, %s4650_s19  }
  0x20   : > { %s266_s5 = sshll.u32 %s4651_s21, 4  ;;  %s4652_s16 = smov 128   ;;  %s267_s5 = int_to_ptr.vmem [resolvable:$true] %s266_s5 }
  0x21   : > { %s4653_s24 = smov 8   ;;  %s33_s23 = sadd.s32 1, %s4638_s9 }
  0x22   : > { %s264_s13 = sshll.u32 %s5162_s6, 4  ;;  %p34_p12 = scmp.ge.s32.totalorder %s33_s23, 2  ;;  %s265_s13 = int_to_ptr.hbm [resolvable:$true] %s264_s13 }
  0x23   : > { %4250 = dma.hbm_to_vmem [thread:$0]  (!%p4245_p11), %s265_s13, 16384, %s267_s5, [#allocation7], %s4652_s16, %s4652_s16, %s4653_s24  }
  0x24   : > { %s36_s12 = sadd.s32 1, %s4642_s10  ;;  %p128_p13 = scmp.ne.s32.totalorder %s4626_s29, %s4622_s28 }
  0x25   : > { %s5187_s23 = smov (%p34_p12, %s33_s23), 0  ;;  %s5189_s12 = smov (!%p34_p12, %s36_s12), %s4642_s10 }
  0x26   : > { %5163 = sst [smem:[#allocation17_spill]] %s5187_s23  ;;  %p129_p1 = scmp.eq.s32.totalorder %s4646_s11, 0 }
  0x27   : > { %p134_p2 = scmp.ne.s32.totalorder %s4622_s28, %s4618_s27  ;;  %p38_p3 = scmp.ge.s32.totalorder %s5189_s12, 2 }
  0x28   : > { %s121_s20 = sadd.s32 1, %s4626_s29  ;;  %s208_s24 = ssub.s32 %s4638_s9, %s5187_s23 }
  0x29   : > { %p4803_p4 = por %p4758_p0, %p134_p2  ;;  %s5191_s12 = smov (%p38_p3, %s5189_s12), 0 }
  0x2a   : > { %5165 = sst [smem:[#allocation18_spill]] %s5191_s12  ;;  %p130_p5 = por %p129_p1, %p128_p13 }
  0x2b   : > { %s212_s16 = sadd.s32 1, %s4614_s26  ;;  %s118_s22 = ssub.s32 %s4642_s10, %s5191_s12 }
  0x2c   : > { %p4261_p7 = scmp.lt.s32.totalorder %s4646_s11, 4  ;;  %p119_p10 = scmp.eq.s32.totalorder %s118_s22, 0 }
  0x2d   : > { %s209_s13 = sor.u32 %s208_s24, %s118_s22  ;;  %s300_s27 = sand.u32 1, %s4626_s29  }
  0x2e   : > { %p210_p11 = scmp.eq.s32.totalorder %s209_s13, 0  ;;  %s4229_s21 = smul.u32 12, %s300_s27 }
  0x2f   : > { %s4817_s18 = scalar_select %p119_p10, %s4626_s29, %s121_s20  }
  0x30   : > { %s4820_s19 = scalar_select %p210_p11, %s4614_s26, %s212_s16  }
  0x31   : > { %p4252_p12 = pnand %p4261_p7, %p130_p5  ;;  %s4230_s6 = smul.u32 12, %s4642_s10 }
  0x32   : > { %s304_s7 = scalar_lea.vmem [#allocation3], %s4229_s21  ;;  %s301_s12 = scalar_lea.sflag [#allocation4], %s300_s27 }
  0x33   : > { %s309_s9 = scalar_lea.hbm %s5135_s3, %s4230_s6  ;;  %s313_s4 = sshll.u32 %s304_s7, 4  ;;  %s314_s4 = int_to_ptr.vmem [resolvable:$true] %s313_s4 }
  0x34   : > { %s311_s2 = sshll.u32 %s309_s9, 4  ;;  %322 = sbr.rel (%p4776_p9) target bundleno = 1238 (0x4d6), region = 48  ;;  %s312_s2 = int_to_ptr.hbm [resolvable:$true] %s311_s2 }
  0x35   : > { %4254 = dma.hbm_to_vmem [thread:$0]  (!%p4252_p12), %s312_s2, 192, %s314_s4, %s301_s12  }
  0x36   : > { %s324_s20 = sand.u32 (!%p4776_p9), 1, %s4622_s28  }
  0x37   : > { %s4231_s24 = smul.u32 (!%p4776_p9), 12, %s324_s20  ;;  %s325_s16 = scalar_lea.sflag (!%p4776_p9), [#allocation4], %s324_s20 }
  0x39   : > { %s4829_s22 = scalar_lea.vmem [#allocation3], %s4231_s24 }
  0x3a   : > { %4593 = dma.done.wait (%p4803_p4), %s325_s16, 192  }
  0x3b   : > { %4595 = vsyncadd (%p4803_p4), %s325_s16, 4294967104 }
  0x3c   : > { %4597 = dma.done.wait (%p4758_p0), [#allocation7], 32768  }
  0x3d   : > { %4599 = vsyncadd (%p4758_p0), [#allocation7], 4294934528  ;;  %s378_s2 = sand.u32 1, %s4610_s25   ;;  %p381_p9 = scmp.lt.s32.totalorder %s4634_s8, 1 }
  0x3e   : > { %s2897_s4 = sshll.u32 %s378_s2, 4  ;;  %p384_p13 = scmp.lt.s32.totalorder %s4630_s30, 1 }
  0x3f   : > { %s4845_s6 = scalar_select %p381_p9, %s4634_s8, 1 }
  0x40   : > { %s385_s7 = scalar_select %p384_p13, %s4630_s30, 1 }
  0x41   : > { %s383_s14 = scalar_lea.vmem %s5132_s0, %s4845_s6  ;;  %s5166_s20 = sld [smem:[#allocation19_spill]] }
  0x42   : > { %s2898_s17 = sshll.u32 %s385_s7, 2  ;;  %s2899_s23 = sshll.u32 %s385_s7, 3 }
  0x43   : > { %s4855_s13 = scalar_lea.vmem %s5133_s1, %s2898_s17  ;;  %s4862_s16 = scalar_lea.vmem [#allocation9], %s2897_s4 }
  0x44   : > { %p2900_p0 = scmp.ne.s32.totalorder %s4630_s30, 0 }
  0x45   : > { %s4654_s7 = smov (!%p2900_p0), 127   ;;  %s4655_s9 = smov (!%p2900_p0), 111  }
  0x46   : > { %396 = sbr.rel (%p2900_p0) target bundleno = 590 (0x24e), region = 64  ;;  %s5167_s17 = sld [smem:[#allocation20_spill]] (!%p2900_p0) }
  0x47   : > { %s4860_s24 = scalar_lea.vmem %s5166_s20, %s2899_s23  ;;  %s4656_s23 = smov (!%p2900_p0), 1  }
  0x48   : > { %s4657_s12 = smov (!%p2900_p0), 95   ;;  %s4658_s5 = smov (!%p2900_p0), 17  }
  0x49   : > { %s4659_s27 = smov (!%p2900_p0), 33  }
  0x4b   : > { %v399_v0 = vld [vmem:[%s4829_s22] sm:$0xff]  ;;  %v4881_v7 = vld [vmem:[%s4829_s22 + $0x8] sm:$0xf]  ;;  %vm413_vm0 = vcmask 1039360   ;;  %vm505_vm1 = vcmask 908288   ;;  %vm571_vm2 = vcmask 777216   ;;  %v422_v44 = vlaneseq }
  0x4c   : > { %v4866_v1 = vunpack.c.l.bf16 %v399_v0  ;;  %v4868_v2 = vunpack.c.h.bf16 %v399_v0  ;;  %v397_v4 = vld [vmem:[%s5167_s17] sm:$0xf]  ;;  %v403_v9 = vunpack.c.l.bf16 %v4881_v7  ;;  %v4890_v16 = vld [vmem:[%s4829_s22 + $0x8] sm:$0xf]  ;;  %vm524_vm5 = vcmask 138240  }
  0x4d   : > { %v4877_v5 = vunpack.c.l.bf16 %v397_v4  ;;  %v561_v17 = vunpack.c.l.bf16 %v4890_v16  ;;  %v492_v30 = vld [vmem:[%s4829_s22 + $0x8] sm:$0xf]  ;;  %v4917_v46 = vand.u32 127, %v422_v44  ;;  %vm450_vm6 = vcmask 7168  }
  0x4e   : > { %v4366_v3 = vpack.i.bf16 %v4868_v2, %v4866_v1  ;;  %v495_v31 = vunpack.c.l.bf16 %v492_v30  ;;  %vm590_vm7 = vcmask 269312   ;;  %vm468_vm8 = vcmask 1043456  }
  0x4f   : > { %v438_v6 = vperm.slane %v4877_v5, 1  ;;  %v439_v18 = vperm.slane %v4877_v5, 5  ;;  %v481_v47 = vperm.slane %v4877_v5, 2  ;;  %v482_v48 = vperm.slane %v4877_v5, 6 }
  0x50   : > { %4367 = vrot.lane.b32.xlu0 %v4366_v3, %s4654_s7  ;;  %v428_v49 = vperm.slane %v4877_v5, 0  ;;  %v429_v50 = vperm.slane %v4877_v5, 4  ;;  %vm478_vm3 = vcmp.lt.s32.totalorder %v4917_v46, 127  ;;  %vm424_vm4 = vcmp.lt.s32.totalorder %v4917_v46, 1 }
  0x51   : > { %v442_v10 = vperm.slane %v438_v6, 1  ;;  %v443_v19 = vperm.slane %v439_v18, 1  ;;  %v4924_v51 = vperm.slane %v481_v47, 2  ;;  %v4928_v53 = vperm.slane %v482_v48, 2 }
  0x52   : > { %v4931_v55 = vperm.slane %v428_v49, 0  ;;  %v4933_v56 = vperm.slane %v429_v50, 0 }
  0x53   : > { %v4371_v20 = vpack.i.bf16 %v443_v19, %v442_v10 }
  0x55   : > { %4372 = vrot.lane.b32.xlu2 %v4371_v20, %s4658_s5 }
  0x58   : > { %4382 = vrot.lane.b32.xlu0 %v4366_v3, %s4655_s9 }
  0x5d   : > { %4377 = vrot.lane.b32.xlu2 %v4371_v20, %s4659_s27 }
  0x65   : > { %4402 = vrot.lane.b32.xlu2 %v4366_v3, %s4657_s12 }
  0xaf   : > { %v4908_v32 = vpop.permute.xlu2 %4372 }
  0xb0   : > { %v4375_v41 = vunpack.i.h.bf16 %v4908_v32 }
  0xb2   : > { %v531_v42 = vmul.f32 %v4375_v41, %v495_v31 }
  0xb4   : > { %v533_v43 = vpack.c.bf16 %v531_v42, %v531_v42 }
  0xb7   : > { %v4910_v33 = vpop.permute.xlu2 %4377 }
  0xb8   : > { %v4380_v7 = vunpack.i.h.bf16 %v4910_v33 }
  0xbf   : > { %v4403_v34 = vpop.permute.xlu2 %4402 }
  0xc0   : > { %v4405_v36 = vunpack.i.h.bf16 %v4403_v34  ;;  %v4404_v37 = vunpack.i.l.bf16 %v4403_v34 }
  0xc2   : > { %v4368_v8 = vpop.permute.xlu0 %4367  ;;  %v572_v38 = vsel %vm571_vm2, %v4404_v37, %v4405_v36 }
  0xc3   : > { %v4370_v11 = vunpack.i.h.bf16 %v4368_v8  ;;  %v4369_v12 = vunpack.i.l.bf16 %v4368_v8 }
  0xc5   : > { %v414_v13 = vsel %vm413_vm0, %v4369_v12, %v4370_v11 }
  0xc6   : > { %v4386_v14 = vpack.i.bf16 %v414_v13, %v403_v9  ;;  %v4391_v15 = vpack.i.bf16 %v442_v10, %v414_v13 }
  0xc8   : > { %4387 = vrot.lane.b32.xlu0 %v4386_v14, %s4654_s7  ;;  %4392 = vrot.lane.b32.xlu1 %v4391_v15, %s4656_s23 }
  0xca   : > { %v4898_v21 = vpop.permute.xlu0 %4382 }
  0xcb   : > { %v4385_v22 = vunpack.i.h.bf16 %v4898_v21  ;;  %v4384_v23 = vunpack.i.l.bf16 %v4898_v21 }
  0xcd   : > { %v506_v27 = vsel %vm505_vm1, %v4384_v23, %v4385_v22 }
  0xd0   : > { %569 = vrot.lane.b32.xlu0 %v561_v17, %s4657_s12 }
 0x13a   : > { %v4388_v24 = vpop.permute.xlu0 %4387  ;;  %v4393_v45 = vpop.permute.xlu1 %4392 }
 0x13b   : > { %v4389_v25 = vunpack.i.l.bf16 %v4388_v24  ;;  %v4390_v57 = vunpack.i.h.bf16 %v4388_v24  ;;  %v4394_v58 = vunpack.i.l.bf16 %v4393_v45  ;;  %v4395_v20 = vunpack.i.h.bf16 %v4393_v45 }
 0x13d   : > { %v415_v26 = vsel %vm413_vm0, %v4370_v11, %v4389_v25 }
 0x13e   : > { %v4406_v28 = vpack.i.bf16 %v506_v27, %v415_v26  ;;  %v4396_v29 = vpack.i.bf16 %v415_v26, %v443_v19  ;;  %v4374_v19 = vunpack.i.l.bf16 %v4908_v32 }
 0x140   : > { %4407 = vrot.lane.b32.xlu0 %v4406_v28, %s4654_s7  ;;  %4397 = vrot.lane.b32.xlu1 %v4396_v29, %s4656_s23  ;;  %v525_v23 = vsel %vm524_vm5, %v4374_v19, %v4375_v41 }
 0x141   : > { %v530_v26 = vmul.f32 %v525_v23, %v4868_v2 }
 0x142   : > { %v570_v35 = vpop.permute.xlu0 %569 }
 0x143   : > { %v573_v39 = vsel %vm571_vm2, %v4405_v36, %v570_v35 }
 0x144   : > { %v4421_v40 = vpack.i.bf16 %v573_v39, %v572_v38 }
 0x148   : > { %503 = vrot.lane.b32.xlu1 %v495_v31, %s4655_s9  ;;  %4422 = vrot.lane.b32.xlu0 %v4421_v40, %s4656_s23  ;;  %v597_v31 = vmul.f32 %v4380_v7, %v561_v17 }
 0x14a   : > { %v599_v36 = vpack.c.bf16 %v597_v31, %v597_v31 }
 0x150   : > { %538 = vrot.lane.b32.xlu0 %v533_v43, %s4655_s9 }
 0x1b2   : > { %v4926_v52 = vpop.permute.xlu0 %4407  ;;  %v4398_v54 = vpop.permute.xlu1 %4397 }
 0x1b3   : > { %v4409_v59 = vunpack.i.l.bf16 %v4926_v52  ;;  %v4400_v60 = vunpack.i.h.bf16 %v4398_v54  ;;  %v4399_v13 = vunpack.i.l.bf16 %v4398_v54  ;;  %v4410_v41 = vunpack.i.h.bf16 %v4926_v52 }
 0x1b5   : > { %v479_v61 = vsel %vm478_vm3, %v4390_v57, %v4409_v59  ;;  %v480_v62 = vsel %vm478_vm3, %v4409_v59, %v4390_v57  ;;  %v425_v63 = vsel %vm424_vm4, %v4394_v58, %v4400_v60  ;;  %v426_v0 = vsel %vm424_vm4, %v4400_v60, %v4394_v58 }
 0x1b6   : > { %v487_v3 = vmul.f32 %v4924_v51, %v479_v61  ;;  %v488_v4 = vmul.f32 %v4928_v53, %v480_v62  ;;  %v434_v5 = vmul.f32 %v4931_v55, %v426_v0  ;;  %v435_v6 = vmul.f32 %v4933_v56, %v425_v63 }
 0x1b7   : > { %v457_v18 = vmul.f32 %v4399_v13, %v403_v9  ;;  %v451_v24 = vsel %vm450_vm6, %v4395_v20, %v4399_v13  ;;  %v4379_v9 = vunpack.i.l.bf16 %v4910_v33 }
 0x1b8   : > { %v489_v8 = vpack.c.bf16 %v488_v4, %v487_v3  ;;  %v436_v10 = vpack.c.bf16 %v435_v6, %v434_v5  ;;  %v456_v25 = vmul.f32 %v451_v24, %v4868_v2 }
 0x1b9   : > { %v459_v21 = vpack.c.bf16 %v457_v18, %v457_v18  ;;  %v591_v30 = vsel %vm590_vm7, %v4379_v9, %v4380_v7  ;;  %v595_v32 = vmul.f32 %v4379_v9, %v4866_v1 }
 0x1ba   : > { %490 = vst [vmem:[#allocation2 + $0x10] sm:$0xff] %v489_v8  ;;  %v504_v11 = vpop.permute.xlu1 %503  ;;  %v596_v34 = vmul.f32 %v591_v30, %v4868_v2  ;;  %v4423_v33 = vpop.permute.xlu0 %4422 }
 0x1bb   : > { %437 = vst [vmem:[#allocation2] sm:$0xff] %v436_v10  ;;  %v507_v12 = vsel %vm505_vm1, %v4385_v22, %v504_v11  ;;  %v529_v22 = vmul.f32 %v4374_v19, %v4866_v1  ;;  %v4425_v37 = vunpack.i.h.bf16 %v4423_v33 }
 0x1bc   : > { %v4411_v14 = vpack.i.bf16 %v507_v12, %v506_v27  ;;  %v4416_v15 = vpack.i.bf16 %v572_v38, %v507_v12  ;;  %v455_v27 = vmul.f32 %v4395_v20, %v4866_v1  ;;  %v598_v35 = vpack.c.bf16 %v596_v34, %v595_v32 }
 0x1bd   : > { %v532_v29 = vpack.c.bf16 %v530_v26, %v529_v22  ;;  %v4424_v38 = vunpack.i.l.bf16 %v4423_v33 }
 0x1be   : > { %4412 = vrot.lane.b32.xlu1 %v4411_v14, %s4656_s23  ;;  %4417 = vrot.lane.b32.xlu2 %v4416_v15, %s4654_s7  ;;  %v458_v28 = vpack.c.bf16 %v456_v25, %v455_v27 }
 0x1bf   : > { %v581_v16 = vsel %vm424_vm4, %v4425_v37, %v4424_v38 }
 0x1c0   : > { %v582_v17 = vmul.f32 %v581_v16, %v4931_v55 }
 0x1c2   : > { %v539_v50 = vpop.permute.xlu0 %538 }
 0x1c3   : > { %v541_v54 = vrot.slane %v539_v50, 4 }
 0x1c6   : > { %615 = vrot.lane.b32.xlu1 %v573_v39, %s4654_s7  ;;  %464 = vrot.lane.b32.xlu2 %v459_v21, %s4654_s7  ;;  %v580_v39 = vsel %vm424_vm4, %v4424_v38, %v4425_v37 }
 0x1c7   : > { %v583_v1 = vmul.f32 %v580_v39, %v4933_v56 }
 0x1c9   : > { %v584_v2 = vpack.c.bf16 %v583_v1, %v582_v17 }
 0x1cb   : > { %585 = vst [vmem:[#allocation2 + $0x30] sm:$0xff] %v584_v2 }
 0x1ce   : > { %462 = vrot.lane.b32.xlu1 %v458_v28, %s4654_s7  ;;  %536 = vrot.lane.b32.xlu2 %v532_v29, %s4655_s9 }
 0x1d6   : > { %602 = vrot.lane.b32.xlu1 %v598_v35, %s4657_s12  ;;  %604 = vrot.lane.b32.xlu2 %v599_v36, %s4657_s12 }
 0x218   : > { %v4418_v40 = vpop.permute.xlu2 %4417 }
 0x219   : > { %v4419_v42 = vunpack.i.l.bf16 %v4418_v40  ;;  %v4420_v6 = vunpack.i.h.bf16 %v4418_v40 }
 0x21b   : > { %v551_v43 = vsel %vm478_vm3, %v4410_v41, %v4419_v42  ;;  %v552_v44 = vsel %vm478_vm3, %v4419_v42, %v4410_v41 }
 0x21c   : > { %v553_v45 = vmul.f32 %v551_v43, %v4924_v51  ;;  %v554_v47 = vmul.f32 %v552_v44, %v4928_v53 }
 0x21e   : > { %v555_v48 = vpack.c.bf16 %v554_v47, %v553_v45 }
 0x220   : > { %556 = vst [vmem:[#allocation2 + $0x28] sm:$0xff] %v555_v48  ;;  %v465_v49 = vpop.permute.xlu2 %464 }
 0x228   : > { %v537_v57 = vpop.permute.xlu2 %536 }
 0x229   : > { %v540_v58 = vrot.slane %v537_v57, 4 }
 0x22b   : > { %v542_v52 = vsel %vm468_vm8, %v540_v58, %v541_v54 }
 0x22c   : > { %v544_v59 = vsel %vm505_vm1, %v537_v57, %v542_v52 }
 0x22d   : > { %546 = vst [vmem:[#allocation2 + $0x20] sm:$0xff] %v544_v59 }
 0x230   : > { %v4413_v60 = vpop.permute.xlu1 %4412  ;;  %v605_v20 = vpop.permute.xlu2 %604 }
 0x231   : > { %v4415_v61 = vunpack.i.h.bf16 %v4413_v60  ;;  %v4414_v62 = vunpack.i.l.bf16 %v4413_v60  ;;  %v607_v23 = vrot.slane %v605_v20, 4 }
 0x233   : > { %v514_v63 = vsel %vm424_vm4, %v4414_v62, %v4415_v61  ;;  %v515_v0 = vsel %vm424_vm4, %v4415_v61, %v4414_v62 }
 0x234   : > { %v516_v3 = vmul.f32 %v515_v0, %v4931_v55  ;;  %v517_v4 = vmul.f32 %v514_v63, %v4933_v56  ;;  %v467_v55 = vrot.slane %v465_v49, 4 }
 0x236   : > { %v518_v5 = vpack.c.bf16 %v517_v4, %v516_v3 }
 0x238   : > { %519 = vst [vmem:[#allocation2 + $0x18] sm:$0xff] %v518_v5  ;;  %v616_v8 = vpop.permute.xlu1 %615 }
 0x239   : > { %v617_v10 = vsel %vm478_vm3, %v4420_v6, %v616_v8  ;;  %v618_v11 = vsel %vm478_vm3, %v616_v8, %v4420_v6 }
 0x23a   : > { %v619_v12 = vmul.f32 %v617_v10, %v4924_v51  ;;  %v620_v13 = vmul.f32 %v618_v11, %v4928_v53 }
 0x23c   : > { %v621_v14 = vpack.c.bf16 %v620_v13, %v619_v12 }
 0x23e   : > { %622 = vst [vmem:[#allocation2 + $0x40] sm:$0xff] %v621_v14 }
 0x240   : > { %v463_v15 = vpop.permute.xlu1 %462 }
 0x241   : > { %v466_v18 = vrot.slane %v463_v15, 4 }
 0x243   : > { %v469_v56 = vsel %vm468_vm8, %v466_v18, %v467_v55 }
 0x244   : > { %v471_v19 = vsel %vm413_vm0, %v463_v15, %v469_v56 }
 0x245   : > { %473 = vst [vmem:[#allocation2 + $0x8] sm:$0xff] %v471_v19 }
 0x248   : > { %v603_v21 = vpop.permute.xlu1 %602 }
 0x249   : > { %v606_v24 = vrot.slane %v603_v21, 4 }
 0x24b   : > { %v608_v46 = vsel %vm468_vm8, %v606_v24, %v607_v23 }
 0x24c   : > { %v610_v51 = vsel %vm571_vm2, %v603_v21, %v608_v46 }
 0x24d   : > { %612 = vst [vmem:[#allocation2 + $0x38] sm:$0xff] %v610_v51 }
 0x24e PF: > { %v623_v53 = vld [vmem:[%s4855_s13] sm:$0xf]  ;;  %vm631_vm9 = vcmask 588800   ;;  %vm711_vm10 = vcmask 1043456   ;;  %v2927_v35 = vld [vmem:[#allocation2 + $0x30] sm:$0xf] }
 0x24f   : > { %v4427_v22 = vld [vmem:[%s383_s14] ss:$0 sm:$0xff]  ;;  %v624_v25 = vunpack.c.l.bf16 %v623_v53  ;;  %v3971_v33 = vld [vmem:[#allocation2 + $0x34] sm:$0xf]  ;;  %v3970_v17 = vld [vmem:[#allocation2 + $0x24] sm:$0xf0] }
 0x250   : > { %v656_v27 = vld [vmem:[#allocation2 + $0x40] sm:$0xff]  ;;  %v2921_v40 = vld [vmem:[#allocation2 + $0x28] sm:$0xf0]  ;;  %v2911_v42 = vld [vmem:[#allocation2 + $0x10] sm:$0xf]  ;;  %v4660_v62 = vmov 0  }
 0x251   : > { %v5007_v26 = vmul.f32 %v4427_v22, %v624_v25  ;;  %v688_v28 = vunpack.c.l.b16 %v656_v27  ;;  %v689_v29 = vunpack.c.h.b16 %v656_v27  ;;  %v2919_v16 = vld [vmem:[#allocation2 + $0x20] sm:$0xf]  ;;  %v3969_v1 = vld [vmem:[#allocation2 + $0x24] sm:$0xf]  ;;  %v3968_v43 = vld [vmem:[#allocation2 + $0x14] sm:$0xf0]  ;;  %4426 = vset.pattern.permute.xlu0 %v4660_v62 }
 0x252   : > { %v2920_v2 = vor.u32 %v3970_v17, %v2919_v16  ;;  %v2924_v41 = vor.u32 %v3969_v1, %v2921_v40  ;;  %v3967_v44 = vld [vmem:[#allocation2 + $0x14] sm:$0xf]  ;;  %v2912_v45 = vor.u32 %v3968_v43, %v2911_v42  ;;  %v2913_v47 = vld [vmem:[#allocation2 + $0x18] sm:$0xf0]  ;;  %v2903_v48 = vld [vmem:[#allocation2] sm:$0xf] }
 0x253   : > { %v630_v7 = vmul.f32 %v5007_v26, %v5007_v26  ;;  %v698_v30 = vpack.c.b16 %v688_v28, %v688_v28  ;;  %v699_v31 = vpack.c.b16 %v689_v29, %v689_v29  ;;  %v3966_v49 = vld [vmem:[#allocation2 + $0x4] sm:$0xf0]  ;;  %v2916_v50 = vor.u32 %v3967_v44, %v2913_v47  ;;  %v3965_v54 = vld [vmem:[#allocation2 + $0x4] sm:$0xf]  ;;  %v2905_v57 = vld [vmem:[#allocation2 + $0x8] sm:$0xf0] }
 0x254   : > { %v3972_v36 = vld [vmem:[#allocation2 + $0x34] sm:$0xf0]  ;;  %v2929_v38 = vld [vmem:[#allocation2 + $0x38] sm:$0xf0]  ;;  %v2904_v58 = vor.u32 %v3966_v49, %v2903_v48  ;;  %v2908_v52 = vor.u32 %v3965_v54, %v2905_v57  ;;  %v657_v59 = vld [vmem:[%s4860_s24] sm:$0xff]  ;;  %s3960_s6 = sshll.u32 %s4630_s30, 1 }
 0x255   : > { %v632_v9 = vsel %vm631_vm9, %v630_v7, 0.0  ;;  %v713_v32 = vsel %vm711_vm10, %v698_v30, 0  ;;  %v716_v34 = vsel %vm711_vm10, %v699_v31, 0  ;;  %v2928_v37 = vor.u32 %v3972_v36, %v2927_v35  ;;  %v3161_v60 = vld [vmem:[#allocation6 + $0x1c0] sm:$0xf]  ;;  %s3961_s14 = sshll.u32 %s4634_s8, 2 }
 0x256   : > { %633 = vadd.xlane.f32.xlu0 %v632_v9  ;;  %721 = vmatpush.bf16.msra.mxu0 %v713_v32  ;;  %v2932_v39 = vor.u32 %v3971_v33, %v2929_v38  ;;  %v4033_v61 = vld [vmem:[#allocation6 + $0x1dc] sm:$0xf0]  ;;  %v4029_v4 = vld [vmem:[#allocation6 + $0x1c4] sm:$0xf]  ;;  %s2744_s13 = sadd.s32 %s3961_s14, %s3960_s6  ;;  %s5170_s9 = sld [smem:[#allocation23_spill]] }
 0x257   : > { %734 = vmatpush.bf16.msra.mxu1 %v716_v34  ;;  %v3162_v63 = vor.u32 %v4033_v61, %v3161_v60  ;;  %v3417_v0 = vld [vmem:[#allocation6 + $0x3c0] sm:$0xf]  ;;  %v3163_v6 = vld [vmem:[#allocation6 + $0x1e0] sm:$0xf0]  ;;  %s3962_s20 = sshll.u32 %s2744_s13, 3  ;;  %s2748_s23 = sshll.u32 %s4862_s16, 4  ;;  %s2749_s23 = int_to_ptr.vmem [resolvable:$true] %s2748_s23 }
 0x258   : > { %v4097_v3 = vld [vmem:[#allocation6 + $0x3dc] sm:$0xf0]  ;;  %v4093_v8 = vld [vmem:[#allocation6 + $0x3c4] sm:$0xf]  ;;  %v3166_v11 = vor.u32 %v4029_v4, %v3163_v6  ;;  %s2733_s30 = scalar_lea.sflag [#allocation5], %s378_s2 }
 0x259   : > { %v3418_v5 = vor.u32 %v4097_v3, %v3417_v0  ;;  %v3419_v10 = vld [vmem:[#allocation6 + $0x3e0] sm:$0xf0]  ;;  %1514 = vmatpush.bf16.msra.mxu2 %v3162_v63  ;;  %v3129_v13 = vld [vmem:[#allocation6 + $0x180] sm:$0xf] }
 0x25a   : > { %722 = vmatpush.bf16.msra.mxu0 %v2928_v37  ;;  %v3422_v12 = vor.u32 %v4093_v8, %v3419_v10  ;;  %v4025_v14 = vld [vmem:[#allocation6 + $0x19c] sm:$0xf0]  ;;  %v4021_v56 = vld [vmem:[#allocation6 + $0x184] sm:$0xf] }
 0x25b   : > { %735 = vmatpush.bf16.msra.mxu1 %v2932_v39  ;;  %v3385_v15 = vld [vmem:[#allocation6 + $0x380] sm:$0xf]  ;;  %1527 = vmatpush.bf16.msra.mxu3 %v3418_v5  ;;  %v3130_v55 = vor.u32 %v4025_v14, %v3129_v13  ;;  %v3131_v19 = vld [vmem:[#allocation6 + $0x1a0] sm:$0xf0] }
 0x25c   : > { %v4089_v18 = vld [vmem:[#allocation6 + $0x39c] sm:$0xf0]  ;;  %v3134_v21 = vor.u32 %v4021_v56, %v3131_v19  ;;  %v4085_v23 = vld [vmem:[#allocation6 + $0x384] sm:$0xf]  ;;  %s5171_s4 = smov %s5170_s9  ;;  %s2746_s15 = scalar_lea.hbm %s5170_s9, %s3962_s20 }
 0x25d   : > { %v3386_v20 = vor.u32 %v4089_v18, %v3385_v15  ;;  %v3387_v24 = vld [vmem:[#allocation6 + $0x3a0] sm:$0xf0]  ;;  %v3097_v46 = vld [vmem:[#allocation6 + $0x140] sm:$0xf]  ;;  %1515 = vmatpush.bf16.msra.mxu2 %v3130_v55  ;;  %s2750_s12 = sshll.u32 %s2746_s15, 4  ;;  %s4540_s21 = scalar_lea.hbm %s5171_s4, 64  ;;  %s2751_s12 = int_to_ptr.hbm [resolvable:$true] %s2750_s12 }
 0x25e   : > { %723 = vmatpush.bf16.msra.mxu0 %v2920_v2  ;;  %v3390_v51 = vor.u32 %v4085_v23, %v3387_v24  ;;  %v4017_v53 = vld [vmem:[#allocation6 + $0x15c] sm:$0xf0]  ;;  %v4013_v27 = vld [vmem:[#allocation6 + $0x144] sm:$0xf]  ;;  %s4534_s8 = sshra.s32 %s2751_s12, 4  ;;  %s4535_s8 = int_to_ptr.hbm [resolvable:$true] %s4534_s8 }
 0x25f   : > { %736 = vmatpush.bf16.msra.mxu1 %v2924_v41  ;;  %v3353_v22 = vld [vmem:[#allocation6 + $0x340] sm:$0xf]  ;;  %v3098_v9 = vor.u32 %v4017_v53, %v3097_v46  ;;  %v3099_v28 = vld [vmem:[#allocation6 + $0x160] sm:$0xf0]  ;;  %1528 = vmatpush.bf16.msra.mxu3 %v3386_v20  ;;  %s4536_s5 = scalar_lea.hbm %s4535_s8, 16  ;;  %p4541_p4 = scmp.lt.s32.totalorder %s4535_s8, %s5171_s4 }
 0x260   : > { %v4081_v25 = vld [vmem:[#allocation6 + $0x35c] sm:$0xf0]  ;;  %v4077_v29 = vld [vmem:[#allocation6 + $0x344] sm:$0xf]  ;;  %v3102_v35 = vor.u32 %v4013_v27, %v3099_v28  ;;  %p4537_p1 = scmp.ne.s32.totalorder %s4535_s8, %s4536_s5  ;;  %p4542_p5 = scmp.lt.s32.totalorder %s4540_s21, %s4536_s5 }
 0x261   : > { %v3354_v31 = vor.u32 %v4081_v25, %v3353_v22  ;;  %v3355_v32 = vld [vmem:[#allocation6 + $0x360] sm:$0xf0]  ;;  %v3065_v34 = vld [vmem:[#allocation6 + $0x100] sm:$0xf]  ;;  %1516 = vmatpush.bf16.msra.mxu2 %v3098_v9 }
 0x262   : > { %724 = vmatpush.bf16.msra.mxu0 %v2912_v45  ;;  %v3358_v36 = vor.u32 %v4077_v29, %v3355_v32  ;;  %v4009_v33 = vld [vmem:[#allocation6 + $0x11c] sm:$0xf0]  ;;  %v4005_v39 = vld [vmem:[#allocation6 + $0x104] sm:$0xf]  ;;  %p4538_p2 = pnand %p4537_p1, %p4767_p6  ;;  %p4543_p7 = por %p4542_p5, %p4541_p4 }
 0x263   : > { %737 = vmatpush.bf16.msra.mxu1 %v2916_v50  ;;  %v3321_v37 = vld [vmem:[#allocation6 + $0x300] sm:$0xf]  ;;  %v3067_v16 = vld [vmem:[#allocation6 + $0x120] sm:$0xf0]  ;;  %v3066_v1 = vor.u32 %v4009_v33, %v3065_v34  ;;  %1529 = vmatpush.bf16.msra.mxu3 %v3354_v31 }
 0x264   : > { %v4073_v38 = vld [vmem:[#allocation6 + $0x31c] sm:$0xf0]  ;;  %v4069_v17 = vld [vmem:[#allocation6 + $0x304] sm:$0xf]  ;;  %v3070_v43 = vor.u32 %v4005_v39, %v3067_v16  ;;  %v3425_v39 = vld [vmem:[#allocation6 + $0x3c8] sm:$0xf]  ;;  %p4539_p3 = pneg %p4538_p2 }
 0x265   : > { %v3323_v2 = vld [vmem:[#allocation6 + $0x320] sm:$0xf0]  ;;  %v3322_v40 = vor.u32 %v4073_v38, %v3321_v37  ;;  %v3033_v41 = vld [vmem:[#allocation6 + $0xc0] sm:$0xf]  ;;  %1517 = vmatpush.bf16.msra.mxu2 %v3066_v1  ;;  %v3169_v37 = vld [vmem:[#allocation6 + $0x1c8] sm:$0xf] }
 0x266   : > { %725 = vmatpush.bf16.msra.mxu0 %v2904_v58  ;;  %v4001_v42 = vld [vmem:[#allocation6 + $0xdc] sm:$0xf0]  ;;  %v3326_v44 = vor.u32 %v4069_v17, %v3323_v2  ;;  %v3997_v48 = vld [vmem:[#allocation6 + $0xc4] sm:$0xf]  ;;  %v4034_v38 = vld [vmem:[#allocation6 + $0x1e4] sm:$0xf0]  ;;  %p4544_p10 = pnand %p4543_p7, %p4539_p3 }
 0x267   : > { %738 = vmatpush.bf16.msra.mxu1 %v2908_v52  ;;  %v3289_v45 = vld [vmem:[#allocation6 + $0x2c0] sm:$0xf]  ;;  %v3035_v49 = vld [vmem:[#allocation6 + $0xe0] sm:$0xf0]  ;;  %v3034_v57 = vor.u32 %v4001_v42, %v3033_v41  ;;  %1530 = vmatpush.bf16.msra.mxu3 %v3322_v40  ;;  %v4098_v17 = vld [vmem:[#allocation6 + $0x3e4] sm:$0xf0] }
 0x268   : > { %v4065_v47 = vld [vmem:[#allocation6 + $0x2dc] sm:$0xf0]  ;;  %v4061_v50 = vld [vmem:[#allocation6 + $0x2c4] sm:$0xf]  ;;  %v3038_v62 = vor.u32 %v3997_v48, %v3035_v49  ;;  %v4030_v1 = vld [vmem:[#allocation6 + $0x1cc] sm:$0xf]  ;;  %v3426_v48 = vor.u32 %v4098_v17, %v3425_v39 }
 0x269   : > { %v3291_v54 = vld [vmem:[#allocation6 + $0x2e0] sm:$0xf0]  ;;  %v3290_v52 = vor.u32 %v4065_v47, %v3289_v45  ;;  %v3993_v60 = vld [vmem:[#allocation6 + $0x9c] sm:$0xf0]  ;;  %1518 = vmatpush.bf16.msra.mxu2 %v3034_v57  ;;  %v3171_v2 = vld [vmem:[#allocation6 + $0x1e8] sm:$0xf0]  ;;  %v3170_v47 = vor.u32 %v4034_v38, %v3169_v37 }
 0x26a   : > { %660 = vperm.xlu0 %4426, %v657_v59   ;;  %1540 = vmatpush.bf16.msrb.mxu0 %v3166_v11  ;;  %v3001_v59 = vld [vmem:[#allocation6 + $0x80] sm:$0xf]  ;;  %v3294_v63 = vor.u32 %v4061_v50, %v3291_v54  ;;  %v3989_v4 = vld [vmem:[#allocation6 + $0x84] sm:$0xf]  ;;  %v4094_v42 = vld [vmem:[#allocation6 + $0x3cc] sm:$0xf]  ;;  %v3174_v49 = vor.u32 %v4030_v1, %v3171_v2 }
 0x26b   : > { %1553 = vmatpush.bf16.msrb.mxu1 %v3422_v12  ;;  %v3257_v0 = vld [vmem:[#allocation6 + $0x280] sm:$0xf]  ;;  %v3003_v5 = vld [vmem:[#allocation6 + $0xa0] sm:$0xf0]  ;;  %v3002_v11 = vor.u32 %v3993_v60, %v3001_v59  ;;  %1531 = vmatpush.bf16.msra.mxu3 %v3290_v52  ;;  %v3137_v50 = vld [vmem:[#allocation6 + $0x188] sm:$0xf] }
 0x26c   : > { %v4057_v3 = vld [vmem:[#allocation6 + $0x29c] sm:$0xf0]  ;;  %v4053_v6 = vld [vmem:[#allocation6 + $0x284] sm:$0xf]  ;;  %v3006_v18 = vor.u32 %v3989_v4, %v3003_v5  ;;  %v4026_v54 = vld [vmem:[#allocation6 + $0x1a4] sm:$0xf0] }
 0x26d   : > { %v3259_v8 = vld [vmem:[#allocation6 + $0x2a0] sm:$0xf0]  ;;  %v3258_v12 = vor.u32 %v4057_v3, %v3257_v0  ;;  %v2969_v13 = vld [vmem:[#allocation6 + $0x40] sm:$0xf]  ;;  %1519 = vmatpush.bf16.msra.mxu2 %v3002_v11  ;;  %v3393_v57 = vld [vmem:[#allocation6 + $0x388] sm:$0xf] }
 0x26e   : > { %1541 = vmatpush.bf16.msrb.mxu0 %v3134_v21  ;;  %v3985_v14 = vld [vmem:[#allocation6 + $0x5c] sm:$0xf0]  ;;  %v3262_v56 = vor.u32 %v4053_v6, %v3259_v8  ;;  %v3981_v20 = vld [vmem:[#allocation6 + $0x44] sm:$0xf]  ;;  %v4022_v52 = vld [vmem:[#allocation6 + $0x18c] sm:$0xf] }
 0x26f   : > { %1554 = vmatpush.bf16.msrb.mxu1 %v3390_v51  ;;  %v3225_v15 = vld [vmem:[#allocation6 + $0x240] sm:$0xf]  ;;  %v2971_v21 = vld [vmem:[#allocation6 + $0x60] sm:$0xf0]  ;;  %v2970_v51 = vor.u32 %v3985_v14, %v2969_v13  ;;  %1532 = vmatpush.bf16.msra.mxu3 %v3258_v12  ;;  %v3139_v59 = vld [vmem:[#allocation6 + $0x1a8] sm:$0xf0] }
 0x270   : > { %v4049_v19 = vld [vmem:[#allocation6 + $0x25c] sm:$0xf0]  ;;  %v4045_v23 = vld [vmem:[#allocation6 + $0x244] sm:$0xf]  ;;  %v2974_v27 = vor.u32 %v3981_v20, %v2971_v21  ;;  %v4086_v60 = vld [vmem:[#allocation6 + $0x38c] sm:$0xf]  ;;  %v3142_v0 = vor.u32 %v4022_v52, %v3139_v59 }
 0x271   : > { %v3227_v24 = vld [vmem:[#allocation6 + $0x260] sm:$0xf0]  ;;  %v3226_v22 = vor.u32 %v4049_v19, %v3225_v15  ;;  %v2937_v25 = vld [vmem:[#allocation6] sm:$0xf]  ;;  %1520 = vmatpush.bf16.msra.mxu2 %v2970_v51  ;;  %v3105_v3 = vld [vmem:[#allocation6 + $0x148] sm:$0xf] }
 0x272   : > { %1542 = vmatpush.bf16.msrb.mxu0 %v3102_v35  ;;  %v3230_v28 = vor.u32 %v4045_v23, %v3227_v24  ;;  %v3193_v29 = vld [vmem:[#allocation6 + $0x200] sm:$0xf]  ;;  %v3973_v32 = vld [vmem:[#allocation6 + $0x4] sm:$0xf]  ;;  %v4018_v4 = vld [vmem:[#allocation6 + $0x164] sm:$0xf0] }
 0x273   : > { %1555 = vmatpush.bf16.msrb.mxu1 %v3358_v36  ;;  %v4041_v31 = vld [vmem:[#allocation6 + $0x21c] sm:$0xf0]  ;;  %v2939_v34 = vld [vmem:[#allocation6 + $0x20] sm:$0xf0]  ;;  %1533 = vmatpush.bf16.msra.mxu3 %v3226_v22  ;;  %v3361_v5 = vld [vmem:[#allocation6 + $0x348] sm:$0xf]  ;;  %v3106_v14 = vor.u32 %v4018_v4, %v3105_v3 }
 0x274   : > { %v3195_v35 = vld [vmem:[#allocation6 + $0x220] sm:$0xf0]  ;;  %v3194_v40 = vor.u32 %v4041_v31, %v3193_v29  ;;  %v2942_v41 = vor.u32 %v3973_v32, %v2939_v34  ;;  %v4082_v8 = vld [vmem:[#allocation6 + $0x364] sm:$0xf0]  ;;  %v3107_v11 = vld [vmem:[#allocation6 + $0x168] sm:$0xf0] }
 0x275   : > { %v4078_v12 = vld [vmem:[#allocation6 + $0x34c] sm:$0xf]  ;;  %v3362_v15 = vor.u32 %v4082_v8, %v3361_v5  ;;  %v3329_v19 = vld [vmem:[#allocation6 + $0x308] sm:$0xf] }
 0x276   : > { %1543 = vmatpush.bf16.msrb.mxu0 %v3070_v43  ;;  %v3427_v43 = vld [vmem:[#allocation6 + $0x3e8] sm:$0xf0]  ;;  %v4074_v21 = vld [vmem:[#allocation6 + $0x324] sm:$0xf0] }
 0x277   : > { %1556 = vmatpush.bf16.msrb.mxu1 %v3326_v44  ;;  %1534 = vmatpush.bf16.msra.mxu3 %v3194_v40  ;;  %v3363_v13 = vld [vmem:[#allocation6 + $0x368] sm:$0xf0]  ;;  %v3330_v22 = vor.u32 %v4074_v21, %v3329_v19  ;;  %v4066_v29 = vld [vmem:[#allocation6 + $0x2e4] sm:$0xf0]  ;;  %v3433_v19 = vld [vmem:[#allocation6 + $0x3d0] sm:$0xf] }
 0x278   : > { %v3366_v20 = vor.u32 %v4078_v12, %v3363_v13  ;;  %v4006_v23 = vld [vmem:[#allocation6 + $0x10c] sm:$0xf]  ;;  %v3009_v37 = vld [vmem:[#allocation6 + $0x88] sm:$0xf]  ;;  %v4031_v21 = vld [vmem:[#allocation6 + $0x1d4] sm:$0xf] }
 0x279   : > { %v3075_v24 = vld [vmem:[#allocation6 + $0x128] sm:$0xf0]  ;;  %v3994_v38 = vld [vmem:[#allocation6 + $0xa4] sm:$0xf0] }
 0x27a   : > { %1544 = vmatpush.bf16.msrb.mxu0 %v3038_v62  ;;  %v3138_v62 = vor.u32 %v4026_v54, %v3137_v50  ;;  %v3331_v51 = vld [vmem:[#allocation6 + $0x328] sm:$0xf0]  ;;  %v3265_v39 = vld [vmem:[#allocation6 + $0x288] sm:$0xf] }
 0x27b   : > { %1557 = vmatpush.bf16.msrb.mxu1 %v3294_v63  ;;  %1579 = vmatpush.bf16.msrb.mxu3 %v3426_v48  ;;  %v3998_v31 = vld [vmem:[#allocation6 + $0xcc] sm:$0xf]  ;;  %v4058_v17 = vld [vmem:[#allocation6 + $0x2a4] sm:$0xf0] }
 0x27c   : > { %v3043_v32 = vld [vmem:[#allocation6 + $0xe8] sm:$0xf0]  ;;  %v3986_v48 = vld [vmem:[#allocation6 + $0x64] sm:$0xf0] }
 0x27d   : > { %v4062_v34 = vld [vmem:[#allocation6 + $0x2cc] sm:$0xf]  ;;  %v4050_v54 = vld [vmem:[#allocation6 + $0x264] sm:$0xf0] }
 0x27e   : > { %1545 = vmatpush.bf16.msrb.mxu0 %v3006_v18  ;;  %v3073_v18 = vld [vmem:[#allocation6 + $0x108] sm:$0xf]  ;;  %v3990_v1 = vld [vmem:[#allocation6 + $0x8c] sm:$0xf] }
 0x27f   : > { %1558 = vmatpush.bf16.msrb.mxu1 %v3262_v56  ;;  %v4010_v56 = vld [vmem:[#allocation6 + $0x124] sm:$0xf0]  ;;  %v3011_v2 = vld [vmem:[#allocation6 + $0xa8] sm:$0xf0] }
 0x280   : > { %v3074_v53 = vor.u32 %v4010_v56, %v3073_v18  ;;  %v4054_v40 = vld [vmem:[#allocation6 + $0x28c] sm:$0xf]  ;;  %v4042_v4 = vld [vmem:[#allocation6 + $0x224] sm:$0xf0] }
 0x281   : > { %v4046_v59 = vld [vmem:[#allocation6 + $0x24c] sm:$0xf] }
 0x282   : > { %1546 = vmatpush.bf16.msrb.mxu0 %v2974_v27  ;;  %v3297_v27 = vld [vmem:[#allocation6 + $0x2c8] sm:$0xf]  ;;  %v3974_v5 = vld [vmem:[#allocation6 + $0xc] sm:$0xf] }
 0x283   : > { %1559 = vmatpush.bf16.msrb.mxu1 %v3230_v28  ;;  %v3203_v12 = vld [vmem:[#allocation6 + $0x228] sm:$0xf0] }
 0x286   : > { %1547 = vmatpush.bf16.msrb.mxu0 %v2942_v41  ;;  %v3267_v41 = vld [vmem:[#allocation6 + $0x2a8] sm:$0xf0] }
 0x2c9   : > { %v634_v7 = vpop.xlane.xlu0 %633 }
 0x2ca   : > { %v5013_v30 = vadd.f32 1e-08, %v634_v7  ;;  %v3977_v7 = vld [vmem:[#allocation6 + $0x1c] sm:$0xf0] }
 0x2cb   : > { %v2938_v33 = vor.u32 %v3977_v7, %v2937_v25  ;;  %v3078_v25 = vor.u32 %v4006_v23, %v3075_v24  ;;  %v3041_v7 = vld [vmem:[#allocation6 + $0xc8] sm:$0xf] }
 0x2cc   : > { %4428 = vrsqrt.f32 %v5013_v30  ;;  %vm642_vm12 = vweird.f32 %v5013_v30 }
 0x2cd   : > { %1521 = vmatpush.bf16.msra.mxu2 %v2938_v33  ;;  %v3046_v33 = vor.u32 %v3998_v31, %v3043_v32  ;;  %v3401_v32 = vld [vmem:[#allocation6 + $0x390] sm:$0xf] }
 0x2d1   : > { %1566 = vmatpush.bf16.msrb.mxu2 %v3170_v47  ;;  %v2977_v47 = vld [vmem:[#allocation6 + $0x48] sm:$0xf] }
 0x2d2   : > { %v4429_v58 = vpop.eup %4428  ;;  %v2978_v50 = vor.u32 %v3986_v48, %v2977_v47  ;;  %v3371_v47 = vld [vmem:[#allocation6 + $0x370] sm:$0xf0] }
 0x2d3   : > { %v637_v61 = vmul.f32 %v4429_v58, %v5013_v30  ;;  %vm643_vm11 = vweird.f32 %v4429_v58  ;;  %v4037_v30 = vld [vmem:[#allocation6 + $0x204] sm:$0xf] }
 0x2d4   : > { %vm5018_vm13 = vmor %vm642_vm12, %vm643_vm11  ;;  %v3198_v45 = vor.u32 %v4037_v30, %v3195_v35  ;;  %v3299_v30 = vld [vmem:[#allocation6 + $0x2e8] sm:$0xf0] }
 0x2d5   : > { %v638_v10 = vmul.f32 %v4429_v58, %v637_v61  ;;  %v3395_v61 = vld [vmem:[#allocation6 + $0x3a8] sm:$0xf0]  ;;  %1567 = vmatpush.bf16.msrb.mxu2 %v3138_v62  ;;  %v2945_v62 = vld [vmem:[#allocation6 + $0x8] sm:$0xf] }
 0x2d6   : > { %1560 = vmatpush.bf16.msrb.mxu1 %v3198_v45  ;;  %v3398_v6 = vor.u32 %v4086_v60, %v3395_v61  ;;  %v3270_v45 = vor.u32 %v4054_v40, %v3267_v41  ;;  %v3235_v60 = vld [vmem:[#allocation6 + $0x268] sm:$0xf0]  ;;  %v3369_v41 = vld [vmem:[#allocation6 + $0x350] sm:$0xf] }
 0x2d7   : > { %v639_v55 = vmul.f32 0.5, %v638_v10  ;;  %v4014_v10 = vld [vmem:[#allocation6 + $0x14c] sm:$0xf]  ;;  %v3238_v61 = vor.u32 %v4046_v59, %v3235_v60  ;;  %v4007_v59 = vld [vmem:[#allocation6 + $0x114] sm:$0xf] }
 0x2d8   : > { %v3083_v60 = vld [vmem:[#allocation6 + $0x130] sm:$0xf0] }
 0x2d9   : > { %v640_v46 = vsub.f32 1.5, %v639_v55  ;;  %v3110_v55 = vor.u32 %v4014_v10, %v3107_v11  ;;  %1568 = vmatpush.bf16.msrb.mxu2 %v3106_v14  ;;  %v4038_v11 = vld [vmem:[#allocation6 + $0x20c] sm:$0xf] }
 0x2da   : > { %v3206_v13 = vor.u32 %v4038_v11, %v3203_v12  ;;  %v3999_v11 = vld [vmem:[#allocation6 + $0xd4] sm:$0xf] }
 0x2db   : > { %v641_v9 = vmul.f32 %v4429_v58, %v640_v46  ;;  %v4070_v46 = vld [vmem:[#allocation6 + $0x30c] sm:$0xf]  ;;  %v3051_v12 = vld [vmem:[#allocation6 + $0xf0] sm:$0xf0] }
 0x2dc   : > { %v3334_v28 = vor.u32 %v4070_v46, %v3331_v51  ;;  %v661_v14 = vpop.permute.xlu0 %660  ;;  %v3179_v46 = vld [vmem:[#allocation6 + $0x1f0] sm:$0xf0] }
 0x2dd   : > { %v645_v36 = vsel %vm5018_vm13, %v4429_v58, %v641_v9  ;;  %v4090_v58 = vld [vmem:[#allocation6 + $0x3a4] sm:$0xf0]  ;;  %1569 = vmatpush.bf16.msrb.mxu2 %v3074_v53  ;;  %v4095_v51 = vld [vmem:[#allocation6 + $0x3d4] sm:$0xf] }
 0x2de   : > { %v646_v16 = vmul.f32 %v645_v36, %v5007_v26  ;;  %v3430_v26 = vor.u32 %v4094_v42, %v3427_v43  ;;  %v3394_v63 = vor.u32 %v4090_v58, %v3393_v57  ;;  %v4002_v9 = vld [vmem:[#allocation6 + $0xe4] sm:$0xf0]  ;;  %v3298_v36 = vor.u32 %v4066_v29, %v3297_v27  ;;  %v3982_v57 = vld [vmem:[#allocation6 + $0x4c] sm:$0xf]  ;;  %v3435_v53 = vld [vmem:[#allocation6 + $0x3f0] sm:$0xf0] }
 0x2df   : > { %v3042_v35 = vor.u32 %v4002_v9, %v3041_v7  ;;  %v3010_v42 = vor.u32 %v3994_v38, %v3009_v37  ;;  %v3266_v43 = vor.u32 %v4058_v17, %v3265_v39  ;;  %v3145_v27 = vld [vmem:[#allocation6 + $0x190] sm:$0xf]  ;;  %v3182_v29 = vor.u32 %v4031_v21, %v3179_v46  ;;  %v3019_v46 = vld [vmem:[#allocation6 + $0xb0] sm:$0xf0] }
 0x2e0   : > { %v647_v44 = vpack.c.bf16 %v646_v16, %v646_v16  ;;  %1580 = vmatpush.bf16.msrb.mxu3 %v3394_v63  ;;  %v3302_v16 = vor.u32 %v4062_v34, %v3299_v30  ;;  %v3978_v63 = vld [vmem:[#allocation6 + $0x24] sm:$0xf0]  ;;  %v3438_v31 = vor.u32 %v4095_v51, %v3435_v53  ;;  %v4091_v34 = vld [vmem:[#allocation6 + $0x3ac] sm:$0xf0]  ;;  %v4023_v30 = vld [vmem:[#allocation6 + $0x194] sm:$0xf] }
 0x2e1   : > { %1570 = vmatpush.bf16.msrb.mxu2 %v3042_v35  ;;  %v2946_v3 = vor.u32 %v3978_v63, %v2945_v62  ;;  %v3147_v35 = vld [vmem:[#allocation6 + $0x1b0] sm:$0xf0]  ;;  %v3402_v38 = vor.u32 %v4091_v34, %v3401_v32  ;;  %v3113_v39 = vld [vmem:[#allocation6 + $0x150] sm:$0xf] }
 0x2e2   : > { %2933 = vmatmul.msk.bf16.vlgmr.msra.gmra.mxu0 %vm631_vm9, %v647_v44  ;;  %2934 = vmatmul.msk.bf16.vlgmr.msra.gmra.mxu1 %vm631_vm9, %v647_v44  ;;  %v3014_v44 = vor.u32 %v3990_v1, %v3011_v2  ;;  %v3150_v2 = vor.u32 %v4023_v30, %v3147_v35  ;;  %v3339_v62 = vld [vmem:[#allocation6 + $0x330] sm:$0xf0]  ;;  %v3273_v21 = vld [vmem:[#allocation6 + $0x290] sm:$0xf] }
 0x2e3   : > { %1592 = vmatpush.bf16.msra.mxu0 %v3174_v49  ;;  %1605 = vmatpush.bf16.msra.mxu1 %v3430_v26  ;;  %v3233_v49 = vld [vmem:[#allocation6 + $0x248] sm:$0xf]  ;;  %v2979_v26 = vld [vmem:[#allocation6 + $0x68] sm:$0xf0]  ;;  %v4055_v51 = vld [vmem:[#allocation6 + $0x294] sm:$0xf] }
 0x2e4   : > { %1581 = vmatpush.bf16.msrb.mxu3 %v3362_v15  ;;  %v3234_v58 = vor.u32 %v4050_v54, %v3233_v49  ;;  %v2982_v52 = vor.u32 %v3982_v57, %v2979_v26  ;;  %v3177_v15 = vld [vmem:[#allocation6 + $0x1d0] sm:$0xf]  ;;  %v3275_v53 = vld [vmem:[#allocation6 + $0x2b0] sm:$0xf0] }
 0x2e5   : > { %1571 = vmatpush.bf16.msrb.mxu2 %v3010_v42  ;;  %v4083_v42 = vld [vmem:[#allocation6 + $0x36c] sm:$0xf0]  ;;  %v3983_v30 = vld [vmem:[#allocation6 + $0x54] sm:$0xf] }
 0x2e6   : > { %v3370_v49 = vor.u32 %v4083_v42, %v3369_v41  ;;  %v4011_v54 = vld [vmem:[#allocation6 + $0x12c] sm:$0xf0]  ;;  %v2987_v35 = vld [vmem:[#allocation6 + $0x70] sm:$0xf0] }
 0x2e7   : > { %1593 = vmatpush.bf16.msra.mxu0 %v3142_v0  ;;  %1606 = vmatpush.bf16.msra.mxu1 %v3398_v6  ;;  %v3201_v0 = vld [vmem:[#allocation6 + $0x208] sm:$0xf]  ;;  %v2947_v6 = vld [vmem:[#allocation6 + $0x28] sm:$0xf0]  ;;  %v3241_v32 = vld [vmem:[#allocation6 + $0x250] sm:$0xf] }
 0x2e8   : > { %1582 = vmatpush.bf16.msrb.mxu3 %v3330_v22  ;;  %v3202_v8 = vor.u32 %v4042_v4, %v3201_v0  ;;  %v2950_v10 = vor.u32 %v3974_v5, %v2947_v6  ;;  %v4003_v4 = vld [vmem:[#allocation6 + $0xec] sm:$0xf0]  ;;  %v3086_v5 = vor.u32 %v4007_v59, %v3083_v60  ;;  %v3975_v41 = vld [vmem:[#allocation6 + $0x14] sm:$0xf] }
 0x2e9   : > { %1572 = vmatpush.bf16.msrb.mxu2 %v2978_v50  ;;  %v3081_v50 = vld [vmem:[#allocation6 + $0x110] sm:$0xf]  ;;  %v2955_v42 = vld [vmem:[#allocation6 + $0x30] sm:$0xf0] }
 0x2ea   : > { %v3082_v63 = vor.u32 %v4011_v54, %v3081_v50  ;;  %v4051_v34 = vld [vmem:[#allocation6 + $0x26c] sm:$0xf0]  ;;  %v4032_v50 = vld [vmem:[#allocation6 + $0x1dc] sm:$0xf]  ;;  %v2958_v59 = vor.u32 %v3975_v41, %v2955_v42 }
 0x2eb   : > { %1594 = vmatpush.bf16.msra.mxu0 %v3110_v55  ;;  %1607 = vmatpush.bf16.msra.mxu1 %v3366_v20  ;;  %v4035_v55 = vld [vmem:[#allocation6 + $0x1ec] sm:$0xf0]  ;;  %v4064_v41 = vld [vmem:[#allocation6 + $0x2dc] sm:$0xf] }
 0x2ec   : > { %1583 = vmatpush.bf16.msrb.mxu3 %v3298_v36  ;;  %v4099_v20 = vld [vmem:[#allocation6 + $0x3ec] sm:$0xf0]  ;;  %v3178_v7 = vor.u32 %v4035_v55, %v3177_v15  ;;  %v4087_v36 = vld [vmem:[#allocation6 + $0x394] sm:$0xf]  ;;  %v3315_v42 = vld [vmem:[#allocation6 + $0x2f8] sm:$0xf0] }
 0x2ed   : > { %1573 = vmatpush.bf16.msrb.mxu2 %v2946_v3  ;;  %v3434_v9 = vor.u32 %v4099_v20, %v3433_v19  ;;  %v3049_v3 = vld [vmem:[#allocation6 + $0xd0] sm:$0xf]  ;;  %v3054_v19 = vor.u32 %v3999_v11, %v3051_v12  ;;  %v4088_v11 = vld [vmem:[#allocation6 + $0x39c] sm:$0xf] }
 0x2ee   : > { %v3050_v15 = vor.u32 %v4003_v4, %v3049_v3  ;;  %v3411_v12 = vld [vmem:[#allocation6 + $0x3b8] sm:$0xf0] }
 0x2ef   : > { %1595 = vmatpush.bf16.msra.mxu0 %v3078_v25  ;;  %1608 = vmatpush.bf16.msra.mxu1 %v3334_v28  ;;  %v4027_v28 = vld [vmem:[#allocation6 + $0x1ac] sm:$0xf0] }
 0x2f0   : > { %1584 = vmatpush.bf16.msrb.mxu3 %v3266_v43  ;;  %v3146_v37 = vor.u32 %v4027_v28, %v3145_v27  ;;  %v4015_v43 = vld [vmem:[#allocation6 + $0x154] sm:$0xf]  ;;  %v2985_v27 = vld [vmem:[#allocation6 + $0x50] sm:$0xf] }
 0x2f1   : > { %v3987_v28 = vld [vmem:[#allocation6 + $0x6c] sm:$0xf0] }
 0x2f3   : > { %1596 = vmatpush.bf16.msra.mxu0 %v3046_v33  ;;  %1609 = vmatpush.bf16.msra.mxu1 %v3302_v16  ;;  %v3403_v33 = vld [vmem:[#allocation6 + $0x3b0] sm:$0xf0]  ;;  %v4019_v16 = vld [vmem:[#allocation6 + $0x16c] sm:$0xf0] }
 0x2f4   : > { %1585 = vmatpush.bf16.msrb.mxu3 %v3234_v58  ;;  %v3406_v40 = vor.u32 %v4087_v36, %v3403_v33  ;;  %v3114_v48 = vor.u32 %v4019_v16, %v3113_v39  ;;  %v3337_v58 = vld [vmem:[#allocation6 + $0x310] sm:$0xf]  ;;  %v4047_v36 = vld [vmem:[#allocation6 + $0x254] sm:$0xf]  ;;  %v3242_v39 = vor.u32 %v4051_v34, %v3241_v32  ;;  %v4008_v32 = vld [vmem:[#allocation6 + $0x11c] sm:$0xf] }
 0x2f5   : > { %v3243_v33 = vld [vmem:[#allocation6 + $0x270] sm:$0xf0]  ;;  %v3979_v16 = vld [vmem:[#allocation6 + $0x2c] sm:$0xf0]  ;;  %v3091_v34 = vld [vmem:[#allocation6 + $0x138] sm:$0xf0] }
 0x2f7   : > { %1597 = vmatpush.bf16.msra.mxu0 %v3014_v44  ;;  %1610 = vmatpush.bf16.msra.mxu1 %v3270_v45  ;;  %v3115_v44 = vld [vmem:[#allocation6 + $0x170] sm:$0xf0] }
 0x2f8   : > { %1586 = vmatpush.bf16.msrb.mxu3 %v3202_v8  ;;  %v4079_v45 = vld [vmem:[#allocation6 + $0x354] sm:$0xf]  ;;  %v3118_v57 = vor.u32 %v4015_v43, %v3115_v44  ;;  %v3305_v8 = vld [vmem:[#allocation6 + $0x2d0] sm:$0xf] }
 0x2f9   : > { %v3374_v26 = vor.u32 %v4079_v45, %v3371_v47  ;;  %v4039_v43 = vld [vmem:[#allocation6 + $0x214] sm:$0xf]  ;;  %v3185_v45 = vld [vmem:[#allocation6 + $0x1d8] sm:$0xf] }
 0x2fa   : > { %v3211_v44 = vld [vmem:[#allocation6 + $0x230] sm:$0xf0]  ;;  %v4036_v47 = vld [vmem:[#allocation6 + $0x1f4] sm:$0xf0] }
 0x2fb   : > { %1598 = vmatpush.bf16.msra.mxu0 %v2982_v52  ;;  %1611 = vmatpush.bf16.msra.mxu1 %v3238_v61  ;;  %v4075_v52 = vld [vmem:[#allocation6 + $0x32c] sm:$0xf0]  ;;  %v4071_v61 = vld [vmem:[#allocation6 + $0x314] sm:$0xf]  ;;  %v3214_v60 = vor.u32 %v4039_v43, %v3211_v44 }
 0x2fc   : > { %v3338_v0 = vor.u32 %v4075_v52, %v3337_v58  ;;  %v3342_v6 = vor.u32 %v4071_v61, %v3339_v62  ;;  %v4096_v58 = vld [vmem:[#allocation6 + $0x3dc] sm:$0xf]  ;;  %v3186_v61 = vor.u32 %v4036_v47, %v3185_v45  ;;  %v3025_v45 = vld [vmem:[#allocation6 + $0x98] sm:$0xf] }
 0x2fd   : > { %v3443_v52 = vld [vmem:[#allocation6 + $0x3f8] sm:$0xf0]  ;;  %v3996_v47 = vld [vmem:[#allocation6 + $0xb4] sm:$0xf0] }
 0x2fe   : > { %v3446_v4 = vor.u32 %v4096_v58, %v3443_v52  ;;  %v4056_v58 = vld [vmem:[#allocation6 + $0x29c] sm:$0xf] }
 0x2ff   : > { %1599 = vmatpush.bf16.msra.mxu0 %v2950_v10  ;;  %1612 = vmatpush.bf16.msra.mxu1 %v3206_v13  ;;  %v4067_v10 = vld [vmem:[#allocation6 + $0x2ec] sm:$0xf0]  ;;  %v4063_v13 = vld [vmem:[#allocation6 + $0x2d4] sm:$0xf]  ;;  %v3283_v52 = vld [vmem:[#allocation6 + $0x2b8] sm:$0xf0] }
 0x300   : > { %v3306_v55 = vor.u32 %v4067_v10, %v3305_v8  ;;  %v4024_v8 = vld [vmem:[#allocation6 + $0x19c] sm:$0xf] }
 0x301   : > { %v3155_v10 = vld [vmem:[#allocation6 + $0x1b8] sm:$0xf0] }
 0x35f   : > { %v727_v18 = vpop.f32.mrf.mxu0  ;;  %v740_v56 = vpop.f32.mrf.mxu1 }
 0x360   : > { %v728_v23 = vadd.f32 %v727_v18, %v661_v14  ;;  %v741_v24 = vadd.f32 %v740_v56, %v661_v14  ;;  %v3307_v14 = vld [vmem:[#allocation6 + $0x2f0] sm:$0xf0]  ;;  %v3017_v18 = vld [vmem:[#allocation6 + $0x90] sm:$0xf] }
 0x361   : > { %v3995_v56 = vld [vmem:[#allocation6 + $0xac] sm:$0xf0]  ;;  %v3310_v20 = vor.u32 %v4063_v13, %v3307_v14 }
 0x362   : > { %v5027_v22 = vpack.c.bf16 %v728_v23, %v728_v23  ;;  %v5029_v25 = vpack.c.bf16 %v741_v24, %v741_v24  ;;  %v4059_v23 = vld [vmem:[#allocation6 + $0x2ac] sm:$0xf0]  ;;  %v3991_v24 = vld [vmem:[#allocation6 + $0x94] sm:$0xf] }
 0x364   : > { %1522 = vmatmul.bf16.vlgmr.msra.gmra.mxu2 %v5027_v22  ;;  %1535 = vmatmul.bf16.vlgmr.msra.gmra.mxu3 %v5029_v25 }
 0x365   : > { %1548 = vmatmul.bf16.vlgmr.msrb.gmra.mxu0 %v5027_v22  ;;  %1561 = vmatmul.bf16.vlgmr.msrb.gmra.mxu1 %v5029_v25 }
 0x366   : > { %1618 = vmatpush.bf16.msra.mxu2 %v3178_v7  ;;  %1631 = vmatpush.bf16.msra.mxu3 %v3434_v9  ;;  %v3018_v7 = vor.u32 %v3995_v56, %v3017_v18  ;;  %v3274_v9 = vor.u32 %v4059_v23, %v3273_v21  ;;  %v3158_v18 = vor.u32 %v4024_v8, %v3155_v10  ;;  %v4016_v21 = vld [vmem:[#allocation6 + $0x15c] sm:$0xf] }
 0x367   : > { %1644 = vmatpush.bf16.msrb.mxu0 %v3182_v29  ;;  %1657 = vmatpush.bf16.msrb.mxu1 %v3438_v31  ;;  %v729_v17 = vpop.f32.mrf.mxu0  ;;  %v742_v1 = vpop.f32.mrf.mxu1  ;;  %v3022_v29 = vor.u32 %v3991_v24, %v3019_v46  ;;  %v3278_v31 = vor.u32 %v4055_v51, %v3275_v53  ;;  %v3414_v56 = vor.u32 %v4088_v11, %v3411_v12  ;;  %v3123_v23 = vld [vmem:[#allocation6 + $0x178] sm:$0xf0] }
 0x368   : > { %v3209_v17 = vld [vmem:[#allocation6 + $0x210] sm:$0xf]  ;;  %v4080_v24 = vld [vmem:[#allocation6 + $0x35c] sm:$0xf] }
 0x369   : > { %v4043_v1 = vld [vmem:[#allocation6 + $0x22c] sm:$0xf0]  ;;  %v3379_v46 = vld [vmem:[#allocation6 + $0x378] sm:$0xf0] }
 0x36a   : > { %1619 = vmatpush.bf16.msra.mxu2 %v3146_v37  ;;  %1632 = vmatpush.bf16.msra.mxu3 %v3402_v38  ;;  %v2953_v37 = vld [vmem:[#allocation6 + $0x10] sm:$0xf]  ;;  %v2986_v38 = vor.u32 %v3987_v28, %v2985_v27  ;;  %v3126_v27 = vor.u32 %v4016_v21, %v3123_v23  ;;  %v3382_v28 = vor.u32 %v4080_v24, %v3379_v46  ;;  %v4048_v8 = vld [vmem:[#allocation6 + $0x25c] sm:$0xf]  ;;  %v4132_v46 = vld [vmem:[#allocation8 + $0xf4] sm:$0xf0] }
 0x36b   : > { %1645 = vmatpush.bf16.msrb.mxu0 %v3150_v2  ;;  %1658 = vmatpush.bf16.msrb.mxu1 %v3406_v40  ;;  %v2990_v2 = vor.u32 %v3983_v30, %v2987_v35  ;;  %v3246_v40 = vor.u32 %v4047_v36, %v3243_v33  ;;  %v2954_v54 = vor.u32 %v3979_v16, %v2953_v37  ;;  %v4072_v30 = vld [vmem:[#allocation6 + $0x31c] sm:$0xf]  ;;  %v3057_v37 = vld [vmem:[#allocation6 + $0xd8] sm:$0xf]  ;;  %v3569_v24 = vld [vmem:[#allocation8 + $0xf0] sm:$0xf] }
 0x36c   : > { %v3347_v35 = vld [vmem:[#allocation6 + $0x338] sm:$0xf0] }
 0x36d   : > { %v3350_v16 = vor.u32 %v4072_v30, %v3347_v35  ;;  %v3251_v10 = vld [vmem:[#allocation6 + $0x278] sm:$0xf0]  ;;  %v4164_v30 = vld [vmem:[#allocation8 + $0x1f4] sm:$0xf0]  ;;  %v4130_v35 = vld [vmem:[#allocation8 + $0xe4] sm:$0xf0] }
 0x36e   : > { %1620 = vmatpush.bf16.msra.mxu2 %v3114_v48  ;;  %1633 = vmatpush.bf16.msra.mxu3 %v3370_v49  ;;  %v3441_v48 = vld [vmem:[#allocation6 + $0x3d8] sm:$0xf]  ;;  %v4040_v21 = vld [vmem:[#allocation6 + $0x21c] sm:$0xf] }
 0x36f   : > { %1646 = vmatpush.bf16.msrb.mxu0 %v3118_v57  ;;  %1659 = vmatpush.bf16.msrb.mxu1 %v3374_v26  ;;  %v4100_v49 = vld [vmem:[#allocation6 + $0x3f4] sm:$0xf0]  ;;  %v3210_v57 = vor.u32 %v4043_v1, %v3209_v17  ;;  %v3187_v26 = vld [vmem:[#allocation6 + $0x1f8] sm:$0xf0] }
 0x370   : > { %v3442_v62 = vor.u32 %v4100_v49, %v3441_v48  ;;  %v3190_v3 = vor.u32 %v4032_v50, %v3187_v26  ;;  %v3313_v17 = vld [vmem:[#allocation6 + $0x2d8] sm:$0xf]  ;;  %v3318_v49 = vor.u32 %v4064_v41, %v3315_v42  ;;  %v3027_v26 = vld [vmem:[#allocation6 + $0xb8] sm:$0xf0]  ;;  %v3633_v42 = vld [vmem:[#allocation8 + $0x170] sm:$0xf] }
 0x371   : > { %v4068_v1 = vld [vmem:[#allocation6 + $0x2f4] sm:$0xf0]  ;;  %v3219_v23 = vld [vmem:[#allocation6 + $0x238] sm:$0xf0] }
 0x372   : > { %1621 = vmatpush.bf16.msra.mxu2 %v3082_v63  ;;  %1634 = vmatpush.bf16.msra.mxu3 %v3338_v0  ;;  %v3153_v63 = vld [vmem:[#allocation6 + $0x198] sm:$0xf]  ;;  %v3314_v44 = vor.u32 %v4068_v1, %v3313_v17  ;;  %v3689_v1 = vld [vmem:[#allocation8 + $0x1e0] sm:$0xf] }
 0x373   : > { %1647 = vmatpush.bf16.msrb.mxu0 %v3086_v5  ;;  %1660 = vmatpush.bf16.msrb.mxu1 %v3342_v6  ;;  %v4028_v0 = vld [vmem:[#allocation6 + $0x1b4] sm:$0xf0] }
 0x374   : > { %1574 = vmatmul.bf16.vlgmr.msrb.gmra.mxu2 %v5027_v22  ;;  %1587 = vmatmul.bf16.vlgmr.msrb.gmra.mxu3 %v5029_v25  ;;  %v3409_v5 = vld [vmem:[#allocation6 + $0x398] sm:$0xf]  ;;  %v3154_v13 = vor.u32 %v4028_v0, %v3153_v63  ;;  %v3286_v0 = vor.u32 %v4056_v58, %v3283_v52  ;;  %v4110_v58 = vld [vmem:[#allocation8 + $0x44] sm:$0xf0]  ;;  %v3625_v52 = vld [vmem:[#allocation8 + $0x160] sm:$0xf] }
 0x375   : > { %1600 = vmatmul.bf16.vlgmr.msra.gmra.mxu0 %v5027_v22  ;;  %1613 = vmatmul.bf16.vlgmr.msra.gmra.mxu1 %v5029_v25  ;;  %v4092_v6 = vld [vmem:[#allocation6 + $0x3b4] sm:$0xf0] }
 0x376   : > { %1622 = vmatpush.bf16.msra.mxu2 %v3050_v15  ;;  %1635 = vmatpush.bf16.msra.mxu3 %v3306_v55  ;;  %v3410_v14 = vor.u32 %v4092_v6, %v3409_v5  ;;  %v3121_v15 = vld [vmem:[#allocation6 + $0x158] sm:$0xf]  ;;  %v3984_v5 = vld [vmem:[#allocation6 + $0x5c] sm:$0xf] }
 0x377   : > { %1648 = vmatpush.bf16.msrb.mxu0 %v3054_v19  ;;  %1661 = vmatpush.bf16.msrb.mxu1 %v3310_v20  ;;  %v4020_v55 = vld [vmem:[#allocation6 + $0x174] sm:$0xf0]  ;;  %v2995_v6 = vld [vmem:[#allocation6 + $0x78] sm:$0xf0] }
 0x378   : > { %v3377_v19 = vld [vmem:[#allocation6 + $0x358] sm:$0xf]  ;;  %v3122_v51 = vor.u32 %v4020_v55, %v3121_v15  ;;  %v2998_v55 = vor.u32 %v3984_v5, %v2995_v6  ;;  %v3617_v6 = vld [vmem:[#allocation8 + $0x150] sm:$0xf] }
 0x379   : > { %v4084_v20 = vld [vmem:[#allocation6 + $0x374] sm:$0xf0] }
 0x37a   : > { %1623 = vmatpush.bf16.msra.mxu2 %v3018_v7  ;;  %1636 = vmatpush.bf16.msra.mxu3 %v3274_v9  ;;  %v3378_v53 = vor.u32 %v4084_v20, %v3377_v19  ;;  %v3089_v7 = vld [vmem:[#allocation6 + $0x118] sm:$0xf]  ;;  %v3976_v19 = vld [vmem:[#allocation6 + $0x1c] sm:$0xf] }
 0x37b   : > { %1649 = vmatpush.bf16.msrb.mxu0 %v3022_v29  ;;  %1662 = vmatpush.bf16.msrb.mxu1 %v3278_v31  ;;  %v4012_v9 = vld [vmem:[#allocation6 + $0x134] sm:$0xf0]  ;;  %v2963_v20 = vld [vmem:[#allocation6 + $0x38] sm:$0xf0] }
 0x37c   : > { %v3345_v29 = vld [vmem:[#allocation6 + $0x318] sm:$0xf]  ;;  %v3090_v36 = vor.u32 %v4012_v9, %v3089_v7 }
 0x37d   : > { %v4076_v31 = vld [vmem:[#allocation6 + $0x334] sm:$0xf0] }
 0x37e   : > { %1624 = vmatpush.bf16.msra.mxu2 %v2986_v38  ;;  %1637 = vmatpush.bf16.msra.mxu3 %v3242_v39  ;;  %v3346_v33 = vor.u32 %v4076_v31, %v3345_v29  ;;  %v4004_v38 = vld [vmem:[#allocation6 + $0xf4] sm:$0xf0]  ;;  %v3094_v39 = vor.u32 %v4008_v32, %v3091_v34  ;;  %v3570_v29 = vor.u32 %v4132_v46, %v3569_v24  ;;  %v3561_v31 = vld [vmem:[#allocation8 + $0xe0] sm:$0xf]  ;;  %v3697_v34 = vld [vmem:[#allocation8 + $0x1f0] sm:$0xf] }
 0x37f   : > { %1650 = vmatpush.bf16.msrb.mxu0 %v2990_v2  ;;  %1663 = vmatpush.bf16.msrb.mxu1 %v3246_v40  ;;  %v4000_v2 = vld [vmem:[#allocation6 + $0xdc] sm:$0xf]  ;;  %v3058_v43 = vor.u32 %v4004_v38, %v3057_v37  ;;  %v3281_v50 = vld [vmem:[#allocation6 + $0x298] sm:$0xf]  ;;  %v3553_v37 = vld [vmem:[#allocation8 + $0xd0] sm:$0xf]  ;;  %v3698_v38 = vor.u32 %v4164_v30, %v3697_v34 }
 0x380   : > { %v3059_v40 = vld [vmem:[#allocation6 + $0xf8] sm:$0xf0]  ;;  %v3217_v15 = vld [vmem:[#allocation6 + $0x218] sm:$0xf]  ;;  %v3761_v30 = vld [vmem:[#allocation8 + $0x270] sm:$0xf] }
 0x381   : > { %v3062_v48 = vor.u32 %v4000_v2, %v3059_v40  ;;  %v4162_v2 = vld [vmem:[#allocation8 + $0x1e4] sm:$0xf0]  ;;  %v3489_v40 = vld [vmem:[#allocation8 + $0x50] sm:$0xf]  ;;  %v4112_v41 = vld [vmem:[#allocation8 + $0x54] sm:$0xf0] }
 0x382   : > { %1625 = vmatpush.bf16.msra.mxu2 %v2954_v54  ;;  %1638 = vmatpush.bf16.msra.mxu3 %v3210_v57  ;;  %v4060_v54 = vld [vmem:[#allocation6 + $0x2b4] sm:$0xf0]  ;;  %v3992_v57 = vld [vmem:[#allocation6 + $0x9c] sm:$0xf] }
 0x383   : > { %1651 = vmatpush.bf16.msrb.mxu0 %v2958_v59  ;;  %1664 = vmatpush.bf16.msrb.mxu1 %v3214_v60  ;;  %v3026_v59 = vor.u32 %v3996_v47, %v3025_v45  ;;  %v3282_v60 = vor.u32 %v4060_v54, %v3281_v50  ;;  %v3030_v63 = vor.u32 %v3992_v57, %v3027_v26  ;;  %v4126_v45 = vld [vmem:[#allocation8 + $0xc4] sm:$0xf0]  ;;  %v3481_v54 = vld [vmem:[#allocation8 + $0x40] sm:$0xf]  ;;  %v3681_v57 = vld [vmem:[#allocation8 + $0x1d0] sm:$0xf] }
 0x384   : > { %v3690_v47 = vor.u32 %v4162_v2, %v3689_v1  ;;  %v3490_v50 = vor.u32 %v4112_v41, %v3489_v40  ;;  %v4160_v26 = vld [vmem:[#allocation8 + $0x1d4] sm:$0xf0]  ;;  %v4178_v1 = vld [vmem:[#allocation8 + $0x264] sm:$0xf0]  ;;  %v3809_v40 = vld [vmem:[#allocation8 + $0x2d0] sm:$0xf] }
 0x385   : > { %1626 = vmatmul.bf16.vlgmr.msra.gmra.mxu2 %v5027_v22  ;;  %1639 = vmatmul.bf16.vlgmr.msra.gmra.mxu3 %v5029_v25  ;;  %v4108_v5 = vld [vmem:[#allocation8 + $0x34] sm:$0xf0] }
 0x386   : > { %1670 = vmatpush.bf16.msrb.mxu2 %v3186_v61  ;;  %1683 = vmatpush.bf16.msrb.mxu3 %v3442_v62  ;;  %v2993_v61 = vld [vmem:[#allocation6 + $0x58] sm:$0xf] }
 0x387   : > { %1696 = vmatpush.bf16.msra.mxu0 %v3190_v3  ;;  %1709 = vmatpush.bf16.msra.mxu1 %v3446_v4  ;;  %v3988_v62 = vld [vmem:[#allocation6 + $0x74] sm:$0xf0] }
 0x388   : > { %1652 = vmatmul.bf16.vlgmr.msrb.gmra.mxu0 %v5027_v22  ;;  %1665 = vmatmul.bf16.vlgmr.msrb.gmra.mxu1 %v5029_v25  ;;  %v3249_v3 = vld [vmem:[#allocation6 + $0x258] sm:$0xf]  ;;  %v2994_v11 = vor.u32 %v3988_v62, %v2993_v61  ;;  %v3682_v61 = vor.u32 %v4160_v26, %v3681_v57  ;;  %v3737_v26 = vld [vmem:[#allocation8 + $0x240] sm:$0xf] }
 0x389   : > { %v4052_v4 = vld [vmem:[#allocation6 + $0x274] sm:$0xf0] }
 0x38a   : > { %1671 = vmatpush.bf16.msrb.mxu2 %v3154_v13  ;;  %1684 = vmatpush.bf16.msrb.mxu3 %v3410_v14  ;;  %v3250_v12 = vor.u32 %v4052_v4, %v3249_v3  ;;  %v2961_v13 = vld [vmem:[#allocation6 + $0x18] sm:$0xf]  ;;  %v3673_v3 = vld [vmem:[#allocation8 + $0x1c0] sm:$0xf]  ;;  %v4158_v4 = vld [vmem:[#allocation8 + $0x1c4] sm:$0xf0] }
 0x38b   : > { %1697 = vmatpush.bf16.msra.mxu0 %v3158_v18  ;;  %1710 = vmatpush.bf16.msra.mxu1 %v3414_v56  ;;  %v3980_v14 = vld [vmem:[#allocation6 + $0x34] sm:$0xf0]  ;;  %v3254_v18 = vor.u32 %v4048_v8, %v3251_v10 }
 0x38c   : > { %v4044_v56 = vld [vmem:[#allocation6 + $0x234] sm:$0xf0]  ;;  %v2962_v7 = vor.u32 %v3980_v14, %v2961_v13  ;;  %v3529_v13 = vld [vmem:[#allocation8 + $0xa0] sm:$0xf] }
 0x38d   : > { %v3218_v9 = vor.u32 %v4044_v56, %v3217_v15  ;;  %v4144_v8 = vld [vmem:[#allocation8 + $0x154] sm:$0xf0]  ;;  %v3665_v15 = vld [vmem:[#allocation8 + $0x1b0] sm:$0xf]  ;;  %v3465_v56 = vld [vmem:[#allocation8 + $0x20] sm:$0xf] }
 0x38e   : > { %1672 = vmatpush.bf16.msrb.mxu2 %v3122_v51  ;;  %1685 = vmatpush.bf16.msrb.mxu3 %v3378_v53  ;;  %v3505_v51 = vld [vmem:[#allocation8 + $0x70] sm:$0xf]  ;;  %v4116_v53 = vld [vmem:[#allocation8 + $0x74] sm:$0xf0]  ;;  %v3618_v10 = vor.u32 %v4144_v8, %v3617_v6 }
 0x38f   : > { %1698 = vmatpush.bf16.msra.mxu0 %v3126_v27  ;;  %1711 = vmatpush.bf16.msra.mxu1 %v3382_v28  ;;  %v2966_v27 = vor.u32 %v3976_v19, %v2963_v20  ;;  %v3222_v28 = vor.u32 %v4040_v21, %v3219_v23  ;;  %v3506_v32 = vor.u32 %v4116_v53, %v3505_v51  ;;  %v4106_v19 = vld [vmem:[#allocation8 + $0x24] sm:$0xf0]  ;;  %v3521_v23 = vld [vmem:[#allocation8 + $0x90] sm:$0xf]  ;;  %v4120_v46 = vld [vmem:[#allocation8 + $0x94] sm:$0xf0] }
 0x390   : > { %v3466_v24 = vor.u32 %v4106_v19, %v3465_v56  ;;  %v3457_v51 = vld [vmem:[#allocation8 + $0x10] sm:$0xf]  ;;  %v4104_v53 = vld [vmem:[#allocation8 + $0x14] sm:$0xf0]  ;;  %v3721_v56 = vld [vmem:[#allocation8 + $0x220] sm:$0xf] }
 0x391   : > { %v4196_v34 = vld [vmem:[#allocation8 + $0x2f4] sm:$0xf0]  ;;  %v3649_v6 = vld [vmem:[#allocation8 + $0x190] sm:$0xf]  ;;  %v4170_v19 = vld [vmem:[#allocation8 + $0x224] sm:$0xf0] }
 0x392   : > { %1673 = vmatpush.bf16.msrb.mxu2 %v3090_v36  ;;  %1686 = vmatpush.bf16.msrb.mxu3 %v3346_v33  ;;  %v3497_v36 = vld [vmem:[#allocation8 + $0x60] sm:$0xf]  ;;  %v4114_v33 = vld [vmem:[#allocation8 + $0x64] sm:$0xf0]  ;;  %v4152_v8 = vld [vmem:[#allocation8 + $0x194] sm:$0xf0] }
 0x393   : > { %1699 = vmatpush.bf16.msra.mxu0 %v3094_v39  ;;  %1712 = vmatpush.bf16.msra.mxu1 %v3350_v16  ;;  %v3562_v39 = vor.u32 %v4130_v35, %v3561_v31  ;;  %v4128_v16 = vld [vmem:[#allocation8 + $0xd4] sm:$0xf0]  ;;  %v3498_v17 = vor.u32 %v4114_v33, %v3497_v36  ;;  %v3449_v31 = vld [vmem:[#allocation8] sm:$0xf] }
 0x394   : > { %v4180_v35 = vld [vmem:[#allocation8 + $0x274] sm:$0xf0] }
 0x396   : > { %1674 = vmatpush.bf16.msrb.mxu2 %v3058_v43  ;;  %1687 = vmatpush.bf16.msrb.mxu3 %v3314_v44  ;;  %v4148_v43 = vld [vmem:[#allocation8 + $0x174] sm:$0xf0]  ;;  %v3545_v44 = vld [vmem:[#allocation8 + $0xc0] sm:$0xf] }
 0x397   : > { %1700 = vmatpush.bf16.msra.mxu0 %v3062_v48  ;;  %1713 = vmatpush.bf16.msra.mxu1 %v3318_v49  ;;  %v3634_v48 = vor.u32 %v4148_v43, %v3633_v42  ;;  %v3554_v49 = vor.u32 %v4128_v16, %v3553_v37  ;;  %v3546_v62 = vor.u32 %v4126_v45, %v3545_v44  ;;  %v4194_v16 = vld [vmem:[#allocation8 + $0x2e4] sm:$0xf0]  ;;  %v4192_v42 = vld [vmem:[#allocation8 + $0x2d4] sm:$0xf0]  ;;  %v3745_v43 = vld [vmem:[#allocation8 + $0x250] sm:$0xf] }
 0x398   : > { %v4176_v44 = vld [vmem:[#allocation8 + $0x254] sm:$0xf0]  ;;  %v3609_v45 = vld [vmem:[#allocation8 + $0x140] sm:$0xf] }
 0x39a   : > { %1675 = vmatpush.bf16.msrb.mxu2 %v3026_v59  ;;  %1688 = vmatpush.bf16.msrb.mxu3 %v3282_v60  ;;  %v4146_v59 = vld [vmem:[#allocation8 + $0x164] sm:$0xf0]  ;;  %v3537_v60 = vld [vmem:[#allocation8 + $0xb0] sm:$0xf] }
 0x39b   : > { %1701 = vmatpush.bf16.msra.mxu0 %v3030_v63  ;;  %1714 = vmatpush.bf16.msra.mxu1 %v3286_v0  ;;  %v3482_v63 = vor.u32 %v4110_v58, %v3481_v54  ;;  %v3473_v0 = vld [vmem:[#allocation8 + $0x30] sm:$0xf]  ;;  %v3746_v54 = vor.u32 %v4176_v44, %v3745_v43  ;;  %v4174_v58 = vld [vmem:[#allocation8 + $0x244] sm:$0xf0] }
 0x39c   : > { %v3474_v14 = vor.u32 %v4108_v5, %v3473_v0  ;;  %v3738_v0 = vor.u32 %v4174_v58, %v3737_v26  ;;  %v4172_v5 = vld [vmem:[#allocation8 + $0x234] sm:$0xf0]  ;;  %v3937_v44 = vld [vmem:[#allocation8 + $0x3d0] sm:$0xf]  ;;  %v3929_v26 = vld [vmem:[#allocation8 + $0x3c0] sm:$0xf] }
 0x39d   : > { %v4222_v58 = vld [vmem:[#allocation8 + $0x3c4] sm:$0xf0] }
 0x39e   : > { %1676 = vmatpush.bf16.msrb.mxu2 %v2994_v11  ;;  %1689 = vmatpush.bf16.msrb.mxu3 %v3250_v12  ;;  %v3674_v11 = vor.u32 %v4158_v4, %v3673_v3  ;;  %v3729_v4 = vld [vmem:[#allocation8 + $0x230] sm:$0xf] }
 0x39f   : > { %1702 = vmatpush.bf16.msra.mxu0 %v2998_v55  ;;  %1715 = vmatpush.bf16.msra.mxu1 %v3254_v18  ;;  %v4156_v55 = vld [vmem:[#allocation8 + $0x1b4] sm:$0xf0]  ;;  %v4122_v18 = vld [vmem:[#allocation8 + $0xa4] sm:$0xf0] }
 0x3a0   : > { %v3666_v20 = vor.u32 %v4156_v55, %v3665_v15  ;;  %v3530_v21 = vor.u32 %v4122_v18, %v3529_v13  ;;  %v4186_v15 = vld [vmem:[#allocation8 + $0x2a4] sm:$0xf0]  ;;  %v3730_v55 = vor.u32 %v4172_v5, %v3729_v4 }
 0x3a1   : > { %v4218_v5 = vld [vmem:[#allocation8 + $0x3a4] sm:$0xf0] }
 0x3a2   : > { %1677 = vmatpush.bf16.msrb.mxu2 %v2962_v7  ;;  %1690 = vmatpush.bf16.msrb.mxu3 %v3218_v9  ;;  %v3522_v7 = vor.u32 %v4120_v46, %v3521_v23  ;;  %v3513_v9 = vld [vmem:[#allocation8 + $0x80] sm:$0xf] }
 0x3a3   : > { %1703 = vmatpush.bf16.msra.mxu0 %v2966_v27  ;;  %1716 = vmatpush.bf16.msra.mxu1 %v3222_v28  ;;  %v4118_v27 = vld [vmem:[#allocation8 + $0x84] sm:$0xf0]  ;;  %v3458_v28 = vor.u32 %v4104_v53, %v3457_v51  ;;  %v4228_v51 = vld [vmem:[#allocation8 + $0x3f4] sm:$0xf0]  ;;  %v3585_v53 = vld [vmem:[#allocation8 + $0x110] sm:$0xf] }
 0x3a4   : > { %v3514_v36 = vor.u32 %v4118_v27, %v3513_v9  ;;  %v3777_v9 = vld [vmem:[#allocation8 + $0x290] sm:$0xf]  ;;  %v4184_v27 = vld [vmem:[#allocation8 + $0x294] sm:$0xf0] }
 0x3a5   : > { %1678 = vmatmul.bf16.vlgmr.msrb.gmra.mxu2 %v5027_v22  ;;  %1691 = vmatmul.bf16.vlgmr.msrb.gmra.mxu3 %v5029_v25 }
 0x3a6   : > { %2535 = vmatpush.bf16.msra.mxu3 %v3570_v29  ;;  %2522 = vmatpush.bf16.msra.mxu2 %v3506_v32  ;;  %v3825_v29 = vld [vmem:[#allocation8 + $0x2f0] sm:$0xf]  ;;  %v4102_v32 = vld [vmem:[#allocation8 + $0x4] sm:$0xf0] }
 0x3a7   : > { %1704 = vmatmul.bf16.vlgmr.msra.gmra.mxu0 %v5027_v22  ;;  %1717 = vmatmul.bf16.vlgmr.msra.gmra.mxu1 %v5029_v25  ;;  %v3626_v22 = vor.u32 %v4146_v59, %v3625_v52  ;;  %v4124_v25 = vld [vmem:[#allocation8 + $0xb4] sm:$0xf0]  ;;  %v3450_v33 = vor.u32 %v4102_v32, %v3449_v31  ;;  %v3826_v37 = vor.u32 %v4196_v34, %v3825_v29  ;;  %v3657_v52 = vld [vmem:[#allocation8 + $0x1a0] sm:$0xf]  ;;  %v4154_v59 = vld [vmem:[#allocation8 + $0x1a4] sm:$0xf0] }
 0x3a8   : > { %2561 = vmatpush.bf16.msrb.mxu1 %v3698_v38  ;;  %2548 = vmatpush.bf16.msrb.mxu0 %v3634_v48  ;;  %v3538_v12 = vor.u32 %v4124_v25, %v3537_v60  ;;  %v3817_v38 = vld [vmem:[#allocation8 + $0x2e0] sm:$0xf]  ;;  %v3810_v48 = vor.u32 %v4192_v42, %v3809_v40  ;;  %v3601_v60 = vld [vmem:[#allocation8 + $0x130] sm:$0xf]  ;;  %v4140_v25 = vld [vmem:[#allocation8 + $0x134] sm:$0xf0] }
 0x3a9   : > { %v3818_v2 = vor.u32 %v4194_v16, %v3817_v38  ;;  %v3602_v3 = vor.u32 %v4140_v25, %v3601_v60  ;;  %v3713_v32 = vld [vmem:[#allocation8 + $0x210] sm:$0xf]  ;;  %v4168_v34 = vld [vmem:[#allocation8 + $0x214] sm:$0xf0]  ;;  %v3778_v38 = vor.u32 %v4184_v27, %v3777_v9  ;;  %v4182_v16 = vld [vmem:[#allocation8 + $0x284] sm:$0xf0] }
 0x3aa   : > { %2536 = vmatpush.bf16.msra.mxu3 %v3562_v39  ;;  %2523 = vmatpush.bf16.msra.mxu2 %v3498_v17  ;;  %v3762_v39 = vor.u32 %v4180_v35, %v3761_v30  ;;  %v3753_v17 = vld [vmem:[#allocation8 + $0x260] sm:$0xf]  ;;  %v4226_v35 = vld [vmem:[#allocation8 + $0x3e4] sm:$0xf0]  ;;  %v4212_v42 = vld [vmem:[#allocation8 + $0x374] sm:$0xf0] }
 0x3ab   : > { %v3754_v41 = vor.u32 %v4178_v1, %v3753_v17  ;;  %v3945_v30 = vld [vmem:[#allocation8 + $0x3e0] sm:$0xf]  ;;  %v3714_v17 = vor.u32 %v4168_v34, %v3713_v32  ;;  %v4166_v40 = vld [vmem:[#allocation8 + $0x204] sm:$0xf0]  ;;  %v3921_v25 = vld [vmem:[#allocation8 + $0x3b0] sm:$0xf] }
 0x3ac   : > { %2562 = vmatpush.bf16.msrb.mxu1 %v3690_v47  ;;  %2549 = vmatpush.bf16.msrb.mxu0 %v3626_v22  ;;  %v4142_v47 = vld [vmem:[#allocation8 + $0x144] sm:$0xf0]  ;;  %v3658_v22 = vor.u32 %v4154_v59, %v3657_v52  ;;  %v3930_v52 = vor.u32 %v4222_v58, %v3929_v26  ;;  %v3873_v59 = vld [vmem:[#allocation8 + $0x350] sm:$0xf]  ;;  %v4129_v27 = vld [vmem:[#allocation8 + $0xe4] sm:$0xf] }
 0x3ad   : > { %v3610_v57 = vor.u32 %v4142_v47, %v3609_v45  ;;  %v4224_v45 = vld [vmem:[#allocation8 + $0x3d4] sm:$0xf0]  ;;  %v3507_v32 = vld [vmem:[#allocation8 + $0x78] sm:$0xf0]  ;;  %v3897_v34 = vld [vmem:[#allocation8 + $0x380] sm:$0xf] }
 0x3ae   : > { %2537 = vmatpush.bf16.msra.mxu3 %v3554_v49  ;;  %2524 = vmatpush.bf16.msra.mxu2 %v3490_v50  ;;  %v3801_v49 = vld [vmem:[#allocation8 + $0x2c0] sm:$0xf]  ;;  %v4190_v50 = vld [vmem:[#allocation8 + $0x2c4] sm:$0xf0]  ;;  %v3938_v47 = vor.u32 %v4224_v45, %v3937_v44  ;;  %v3547_v26 = vld [vmem:[#allocation8 + $0xc8] sm:$0xf0] }
 0x3b0   : > { %2563 = vmatpush.bf16.msrb.mxu1 %v3682_v61  ;;  %2550 = vmatpush.bf16.msrb.mxu0 %v3618_v10  ;;  %v3802_v61 = vor.u32 %v4190_v50, %v3801_v49  ;;  %v3650_v10 = vor.u32 %v4152_v8, %v3649_v6  ;;  %v3881_v50 = vld [vmem:[#allocation8 + $0x360] sm:$0xf] }
 0x3b2   : > { %2538 = vmatpush.bf16.msra.mxu3 %v3546_v62  ;;  %2525 = vmatpush.bf16.msra.mxu2 %v3482_v63  ;;  %v3793_v62 = vld [vmem:[#allocation8 + $0x2b0] sm:$0xf]  ;;  %v4188_v63 = vld [vmem:[#allocation8 + $0x2b4] sm:$0xf0] }
 0x3b3   : > { %v3794_v13 = vor.u32 %v4188_v63, %v3793_v62  ;;  %v3865_v63 = vld [vmem:[#allocation8 + $0x340] sm:$0xf] }
 0x3b4   : > { %2564 = vmatpush.bf16.msrb.mxu1 %v3674_v11  ;;  %2551 = vmatpush.bf16.msrb.mxu0 %v3610_v57  ;;  %v3593_v11 = vld [vmem:[#allocation8 + $0x120] sm:$0xf] }
 0x3b6   : > { %2539 = vmatpush.bf16.msra.mxu3 %v3538_v12  ;;  %2526 = vmatpush.bf16.msra.mxu2 %v3474_v14  ;;  %v4138_v12 = vld [vmem:[#allocation8 + $0x124] sm:$0xf0]  ;;  %v3785_v14 = vld [vmem:[#allocation8 + $0x2a0] sm:$0xf] }
 0x3b7   : > { %v3594_v18 = vor.u32 %v4138_v12, %v3593_v11  ;;  %v3786_v46 = vor.u32 %v4186_v15, %v3785_v14  ;;  %v3857_v12 = vld [vmem:[#allocation8 + $0x330] sm:$0xf]  ;;  %v4131_v14 = vld [vmem:[#allocation8 + $0xf4] sm:$0xf]  ;;  %v3571_v15 = vld [vmem:[#allocation8 + $0xf8] sm:$0xf0] }
 0x3b8   : > { %2565 = vmatpush.bf16.msrb.mxu1 %v3666_v20  ;;  %2552 = vmatpush.bf16.msrb.mxu0 %v3602_v3  ;;  %v3641_v20 = vld [vmem:[#allocation8 + $0x180] sm:$0xf] }
 0x3b9   : > { %v3913_v3 = vld [vmem:[#allocation8 + $0x3a0] sm:$0xf] }
 0x3ba   : > { %2540 = vmatpush.bf16.msra.mxu3 %v3530_v21  ;;  %2527 = vmatpush.bf16.msra.mxu2 %v3466_v24  ;;  %v4150_v21 = vld [vmem:[#allocation8 + $0x184] sm:$0xf0]  ;;  %v3953_v24 = vld [vmem:[#allocation8 + $0x3f0] sm:$0xf]  ;;  %v3914_v6 = vor.u32 %v4218_v5, %v3913_v3  ;;  %v4109_v3 = vld [vmem:[#allocation8 + $0x44] sm:$0xf] }
 0x3bb   : > { %v3642_v23 = vor.u32 %v4150_v21, %v3641_v20  ;;  %v3954_v29 = vor.u32 %v4228_v51, %v3953_v24  ;;  %v3574_v24 = vor.u32 %v4131_v14, %v3571_v15  ;;  %v3849_v51 = vld [vmem:[#allocation8 + $0x320] sm:$0xf]  ;;  %v3699_v5 = vld [vmem:[#allocation8 + $0x1f8] sm:$0xf0]  ;;  %v4121_v14 = vld [vmem:[#allocation8 + $0xa4] sm:$0xf] }
 0x3bc   : > { %2566 = vmatpush.bf16.msrb.mxu1 %v3658_v22  ;;  %2553 = vmatpush.bf16.msrb.mxu0 %v3594_v18  ;;  %v4208_v22 = vld [vmem:[#allocation8 + $0x354] sm:$0xf0] }
 0x3bd   : > { %v3874_v60 = vor.u32 %v4208_v22, %v3873_v59  ;;  %v3491_v59 = vld [vmem:[#allocation8 + $0x58] sm:$0xf0] }
 0x3be   : > { %2541 = vmatpush.bf16.msra.mxu3 %v3522_v7  ;;  %2528 = vmatpush.bf16.msra.mxu2 %v3458_v28  ;;  %v4136_v7 = vld [vmem:[#allocation8 + $0x114] sm:$0xf0]  ;;  %v3722_v28 = vor.u32 %v4170_v19, %v3721_v56  ;;  %v3905_v56 = vld [vmem:[#allocation8 + $0x390] sm:$0xf] }
 0x3bf   : > { %v3586_v31 = vor.u32 %v4136_v7, %v3585_v53  ;;  %v4216_v19 = vld [vmem:[#allocation8 + $0x394] sm:$0xf0]  ;;  %v4202_v53 = vld [vmem:[#allocation8 + $0x324] sm:$0xf0] }
 0x3c0   : > { %2567 = vmatpush.bf16.msrb.mxu1 %v3650_v10 }
 0x3c1   : > { %2554 = vmatpush.bf16.msrb.mxu0 %v3586_v31  ;;  %v3850_v31 = vor.u32 %v4202_v53, %v3849_v51 }
 0x3c2   : > { %2542 = vmatpush.bf16.msra.mxu3 %v3514_v36  ;;  %2529 = vmatpush.bf16.msra.mxu2 %v3450_v33  ;;  %v3946_v36 = vor.u32 %v4226_v35, %v3945_v30  ;;  %v3577_v33 = vld [vmem:[#allocation8 + $0x100] sm:$0xf]  ;;  %v4214_v30 = vld [vmem:[#allocation8 + $0x384] sm:$0xf0] }
 0x3c4   : > { %2568 = vmatpush.bf16.msrb.mxu1 %v3642_v23 }
 0x3c6   : > { %2587 = vmatpush.bf16.msrb.mxu3 %v3826_v37  ;;  %2574 = vmatpush.bf16.msrb.mxu2 %v3762_v39  ;;  %v4134_v37 = vld [vmem:[#allocation8 + $0x104] sm:$0xf0]  ;;  %v3769_v39 = vld [vmem:[#allocation8 + $0x280] sm:$0xf] }
 0x3c7   : > { %v3578_v1 = vor.u32 %v4134_v37, %v3577_v33  ;;  %v3898_v37 = vor.u32 %v4214_v30, %v3897_v34  ;;  %v3523_v34 = vld [vmem:[#allocation8 + $0x98] sm:$0xf0]  ;;  %v4105_v30 = vld [vmem:[#allocation8 + $0x24] sm:$0xf] }
 0x3c8   : > { %2613 = vmatpush.bf16.msra.mxu1 %v3954_v29  ;;  %v4115_v29 = vld [vmem:[#allocation8 + $0x74] sm:$0xf] }
 0x3c9   : > { %2555 = vmatpush.bf16.msrb.mxu0 %v3578_v1  ;;  %v3555_v1 = vld [vmem:[#allocation8 + $0xd8] sm:$0xf0] }
 0x3ca   : > { %2588 = vmatpush.bf16.msrb.mxu3 %v3818_v2  ;;  %2575 = vmatpush.bf16.msrb.mxu2 %v3754_v41  ;;  %v3705_v2 = vld [vmem:[#allocation8 + $0x200] sm:$0xf]  ;;  %v3889_v41 = vld [vmem:[#allocation8 + $0x370] sm:$0xf] }
 0x3cb   : > { %v3890_v43 = vor.u32 %v4212_v42, %v3889_v41  ;;  %v3706_v49 = vor.u32 %v4166_v40, %v3705_v2  ;;  %v3841_v2 = vld [vmem:[#allocation8 + $0x310] sm:$0xf]  ;;  %v4200_v40 = vld [vmem:[#allocation8 + $0x314] sm:$0xf0]  ;;  %v4113_v42 = vld [vmem:[#allocation8 + $0x64] sm:$0xf] }
 0x3cc   : > { %2614 = vmatpush.bf16.msra.mxu1 %v3946_v36  ;;  %v3842_v44 = vor.u32 %v4200_v40, %v3841_v2 }
 0x3cd   : > { %2600 = vmatpush.bf16.msra.mxu0 %v3890_v43  ;;  %v3499_v43 = vld [vmem:[#allocation8 + $0x68] sm:$0xf0] }
 0x3ce   : > { %2589 = vmatpush.bf16.msrb.mxu3 %v3810_v48  ;;  %2576 = vmatpush.bf16.msrb.mxu2 %v3746_v54  ;;  %v3770_v48 = vor.u32 %v4182_v16, %v3769_v39  ;;  %v4210_v54 = vld [vmem:[#allocation8 + $0x364] sm:$0xf0]  ;;  %v4127_v39 = vld [vmem:[#allocation8 + $0xd4] sm:$0xf] }
 0x3cf   : > { %v3882_v57 = vor.u32 %v4210_v54, %v3881_v50  ;;  %v4198_v50 = vld [vmem:[#allocation8 + $0x304] sm:$0xf0]  ;;  %v3502_v54 = vor.u32 %v4113_v42, %v3499_v43  ;;  %v4117_v43 = vld [vmem:[#allocation8 + $0x84] sm:$0xf] }
 0x3d0   : > { %2615 = vmatpush.bf16.msra.mxu1 %v3938_v47 }
 0x3d1   : > { %2601 = vmatpush.bf16.msra.mxu0 %v3882_v57  ;;  %v4125_v57 = vld [vmem:[#allocation8 + $0xc4] sm:$0xf] }
 0x3d2   : > { %2590 = vmatpush.bf16.msrb.mxu3 %v3802_v61  ;;  %2577 = vmatpush.bf16.msrb.mxu2 %v3738_v0  ;;  %v4220_v61 = vld [vmem:[#allocation8 + $0x3b4] sm:$0xf0]  ;;  %v4206_v0 = vld [vmem:[#allocation8 + $0x344] sm:$0xf0] }
 0x3d3   : > { %v3922_v62 = vor.u32 %v4220_v61, %v3921_v25  ;;  %v3866_v4 = vor.u32 %v4206_v0, %v3865_v63  ;;  %v3550_v61 = vor.u32 %v4125_v57, %v3547_v26  ;;  %v3539_v63 = vld [vmem:[#allocation8 + $0xb8] sm:$0xf0]  ;;  %v4143_v57 = vld [vmem:[#allocation8 + $0x154] sm:$0xf] }
 0x3d4   : > { %2616 = vmatpush.bf16.msra.mxu1 %v3930_v52  ;;  %v4111_v52 = vld [vmem:[#allocation8 + $0x54] sm:$0xf]  ;;  %v3619_v26 = vld [vmem:[#allocation8 + $0x158] sm:$0xf0] }
 0x3d5   : > { %2602 = vmatpush.bf16.msra.mxu0 %v3874_v60  ;;  %v3494_v0 = vor.u32 %v4111_v52, %v3491_v59 }
 0x3d6   : > { %2591 = vmatpush.bf16.msrb.mxu3 %v3794_v13  ;;  %2578 = vmatpush.bf16.msrb.mxu2 %v3730_v55  ;;  %v4204_v13 = vld [vmem:[#allocation8 + $0x334] sm:$0xf0] }
 0x3d7   : > { %v3858_v55 = vor.u32 %v4204_v13, %v3857_v12 }
 0x3d8   : > { %2617 = vmatpush.bf16.msra.mxu1 %v3922_v62  ;;  %v4123_v62 = vld [vmem:[#allocation8 + $0xb4] sm:$0xf] }
 0x3d9   : > { %2603 = vmatpush.bf16.msra.mxu0 %v3866_v4  ;;  %v4163_v4 = vld [vmem:[#allocation8 + $0x1f4] sm:$0xf]  ;;  %v3542_v13 = vor.u32 %v4123_v62, %v3539_v63  ;;  %v3827_v62 = vld [vmem:[#allocation8 + $0x2f8] sm:$0xf0]  ;;  %v4101_v63 = vld [vmem:[#allocation8 + $0x4] sm:$0xf] }
 0x3da   : > { %2592 = vmatpush.bf16.msrb.mxu3 %v3786_v46  ;;  %2579 = vmatpush.bf16.msrb.mxu2 %v3722_v28  ;;  %v3906_v46 = vor.u32 %v4216_v19, %v3905_v56  ;;  %v3563_v28 = vld [vmem:[#allocation8 + $0xe8] sm:$0xf0]  ;;  %v3702_v15 = vor.u32 %v4163_v4, %v3699_v5  ;;  %v4155_v4 = vld [vmem:[#allocation8 + $0x1b4] sm:$0xf]  ;;  %v3667_v5 = vld [vmem:[#allocation8 + $0x1b8] sm:$0xf0] }
 0x3db   : > { %v3531_v19 = vld [vmem:[#allocation8 + $0xa8] sm:$0xf0] }
 0x3dc   : > { %2618 = vmatpush.bf16.msra.mxu1 %v3914_v6 }
 0x3dd   : > { %2604 = vmatpush.bf16.msra.mxu0 %v3858_v55 }
 0x3de   : > { %2593 = vmatpush.bf16.msrb.mxu3 %v3778_v38  ;;  %2580 = vmatpush.bf16.msrb.mxu2 %v3714_v17  ;;  %v3566_v38 = vor.u32 %v4129_v27, %v3563_v28  ;;  %v3510_v17 = vor.u32 %v4115_v29, %v3507_v32  ;;  %v3635_v27 = vld [vmem:[#allocation8 + $0x178] sm:$0xf0]  ;;  %v3534_v28 = vor.u32 %v4121_v14, %v3531_v19  ;;  %v4119_v32 = vld [vmem:[#allocation8 + $0x94] sm:$0xf] }
 0x3df   : > { %v3526_v40 = vor.u32 %v4119_v32, %v3523_v34 }
 0x3e0   : > { %2619 = vmatpush.bf16.msra.mxu1 %v3906_v46  ;;  %v4147_v46 = vld [vmem:[#allocation8 + $0x174] sm:$0xf] }
 0x3e1   : > { %2605 = vmatpush.bf16.msra.mxu0 %v3850_v31 }
 0x3e2   : > { %2594 = vmatpush.bf16.msrb.mxu3 %v3770_v48  ;;  %2581 = vmatpush.bf16.msrb.mxu2 %v3706_v49  ;;  %v1549_v8 = vpop.f32.mrf.mxu0  ;;  %v1562_v10 = vpop.f32.mrf.mxu1  ;;  %v3558_v48 = vor.u32 %v4127_v39, %v3555_v1  ;;  %v3833_v49 = vld [vmem:[#allocation8 + $0x300] sm:$0xf]  ;;  %v3683_v39 = vld [vmem:[#allocation8 + $0x1d8] sm:$0xf0] }
 0x3e3   : > { %v1563_v11 = vadd.f32 %v1562_v10, %v1549_v8  ;;  %v3834_v58 = vor.u32 %v4198_v50, %v3833_v49  ;;  %v3483_v8 = vld [vmem:[#allocation8 + $0x48] sm:$0xf0]  ;;  %v4157_v50 = vld [vmem:[#allocation8 + $0x1c4] sm:$0xf] }
 0x3e4   : > { %2620 = vmatpush.bf16.msra.mxu1 %v3898_v37  ;;  %v3486_v56 = vor.u32 %v4109_v3, %v3483_v8  ;;  %v3638_v37 = vor.u32 %v4147_v46, %v3635_v27  ;;  %v3622_v3 = vor.u32 %v4143_v57, %v3619_v26  ;;  %v3747_v57 = vld [vmem:[#allocation8 + $0x258] sm:$0xf0] }
 0x3e5   : > { %vm1723_vm14 = vcmp.ge.f32.partialorder %v1563_v11, 0.0  ;;  %v1731_v18 = vmul.f32 0.2, %v1563_v11  ;;  %2606 = vmatpush.bf16.msra.mxu0 %v3842_v44  ;;  %v3515_v44 = vld [vmem:[#allocation8 + $0x88] sm:$0xf0] }
 0x3e7   : > { %v1739_v20 = vsel %vm1723_vm14, %v1563_v11, %v1731_v18  ;;  %v1523_v21 = vpop.f32.mrf.mxu2  ;;  %v1536_v23 = vpop.f32.mrf.mxu3 }
 0x3e8   : > { %v5047_v7 = vpack.c.bf16 %v1739_v20, %v1739_v20  ;;  %v1537_v9 = vadd.f32 %v1536_v23, %v1523_v21  ;;  %v4107_v20 = vld [vmem:[#allocation8 + $0x34] sm:$0xf]  ;;  %v3475_v21 = vld [vmem:[#allocation8 + $0x38] sm:$0xf0]  ;;  %v4161_v23 = vld [vmem:[#allocation8 + $0x1e4] sm:$0xf] }
 0x3e9   : > { %2607 = vmatpush.bf16.msra.mxu0 %v3834_v58  ;;  %v3478_v31 = vor.u32 %v4107_v20, %v3475_v21  ;;  %v3518_v58 = vor.u32 %v4117_v43, %v3515_v44  ;;  %v3819_v21 = vld [vmem:[#allocation8 + $0x2e8] sm:$0xf0] }
 0x3ea   : > { %vm1722_vm15 = vcmp.ge.f32.partialorder %v1537_v9, 0.0  ;;  %v1730_v35 = vmul.f32 0.2, %v1537_v9  ;;  %v1551_v36 = vpop.f32.mrf.mxu0  ;;  %v1564_v33 = vpop.f32.mrf.mxu1  ;;  %2543 = vmatmul.bf16.vlgmr.msra.gmra.mxu3 %v5047_v7 }
 0x3eb   : > { %2639 = vmatpush.bf16.msra.mxu3 %v3574_v24  ;;  %v3691_v24 = vld [vmem:[#allocation8 + $0x1e8] sm:$0xf0] }
 0x3ec   : > { %v1738_v16 = vsel %vm1722_vm15, %v1537_v9, %v1730_v35  ;;  %v3694_v35 = vor.u32 %v4161_v23, %v3691_v24  ;;  %v3467_v33 = vld [vmem:[#allocation8 + $0x28] sm:$0xf0]  ;;  %v4179_v23 = vld [vmem:[#allocation8 + $0x274] sm:$0xf]  ;;  %v3763_v24 = vld [vmem:[#allocation8 + $0x278] sm:$0xf0] }
 0x3ed   : > { %v5050_v41 = vpack.c.bf16 %v1738_v16, %v1738_v16  ;;  %v4145_v16 = vld [vmem:[#allocation8 + $0x164] sm:$0xf]  ;;  %v3470_v42 = vor.u32 %v4105_v30, %v3467_v33  ;;  %v3766_v30 = vor.u32 %v4179_v23, %v3763_v24  ;;  %v3811_v33 = vld [vmem:[#allocation8 + $0x2d8] sm:$0xf0]  ;;  %v3723_v24 = vld [vmem:[#allocation8 + $0x228] sm:$0xf0] }
 0x3ee   : > { %v4169_v23 = vld [vmem:[#allocation8 + $0x224] sm:$0xf] }
 0x3ef   : > { %v1525_v45 = vpop.f32.mrf.mxu2  ;;  %v1538_v47 = vpop.f32.mrf.mxu3  ;;  %2530 = vmatmul.bf16.vlgmr.msra.gmra.mxu2 %v5050_v41  ;;  %2640 = vmatpush.bf16.msra.mxu3 %v3566_v38  ;;  %v4159_v38 = vld [vmem:[#allocation8 + $0x1d4] sm:$0xf] }
 0x3f0   : > { %2626 = vmatpush.bf16.msra.mxu2 %v3510_v17  ;;  %v3627_v17 = vld [vmem:[#allocation8 + $0x168] sm:$0xf0]  ;;  %v4103_v45 = vld [vmem:[#allocation8 + $0x14] sm:$0xf]  ;;  %v3686_v47 = vor.u32 %v4159_v38, %v3683_v39 }
 0x3f1   : > { %v3630_v49 = vor.u32 %v4145_v16, %v3627_v17  ;;  %v3755_v16 = vld [vmem:[#allocation8 + $0x268] sm:$0xf0] }
 0x3f2   : > { %v1601_v22 = vpop.f32.mrf.mxu0  ;;  %v1614_v60 = vpop.f32.mrf.mxu1 }
 0x3f3   : > { %v1615_v25 = vadd.f32 %v1614_v60, %v1601_v22  ;;  %2641 = vmatpush.bf16.msra.mxu3 %v3558_v48  ;;  %v3459_v48 = vld [vmem:[#allocation8 + $0x18] sm:$0xf0]  ;;  %v4195_v22 = vld [vmem:[#allocation8 + $0x2f4] sm:$0xf] }
 0x3f4   : > { %2627 = vmatpush.bf16.msra.mxu2 %v3502_v54  ;;  %v3675_v54 = vld [vmem:[#allocation8 + $0x1c8] sm:$0xf0]  ;;  %v3462_v60 = vor.u32 %v4103_v45, %v3459_v48  ;;  %v4189_v48 = vld [vmem:[#allocation8 + $0x2c4] sm:$0xf] }
 0x3f5   : > { %vm1725_vm0 = vcmp.ge.f32.partialorder %v1615_v25, 0.0  ;;  %v1733_v6 = vmul.f32 0.2, %v1615_v25 }
 0x3f7   : > { %v1741_v10 = vsel %vm1725_vm0, %v1615_v25, %v1733_v6  ;;  %v1575_v11 = vpop.f32.mrf.mxu2  ;;  %v1588_v12 = vpop.f32.mrf.mxu3  ;;  %2642 = vmatpush.bf16.msra.mxu3 %v3550_v61  ;;  %v3678_v25 = vor.u32 %v4157_v50, %v3675_v54  ;;  %v4141_v6 = vld [vmem:[#allocation8 + $0x144] sm:$0xf]  ;;  %v4175_v50 = vld [vmem:[#allocation8 + $0x254] sm:$0xf] }
 0x3f8   : > { %v5053_v55 = vpack.c.bf16 %v1741_v10, %v1741_v10  ;;  %v1589_v18 = vadd.f32 %v1588_v12, %v1575_v11  ;;  %2628 = vmatpush.bf16.msra.mxu2 %v3494_v0  ;;  %v3451_v0 = vld [vmem:[#allocation8 + $0x8] sm:$0xf0] }
 0x3f9   : > { %v3611_v10 = vld [vmem:[#allocation8 + $0x148] sm:$0xf0]  ;;  %v3454_v11 = vor.u32 %v4101_v63, %v3451_v0  ;;  %v4173_v0 = vld [vmem:[#allocation8 + $0x244] sm:$0xf] }
 0x3fa   : > { %vm1724_vm1 = vcmp.ge.f32.partialorder %v1589_v18, 0.0  ;;  %v1732_v51 = vmul.f32 0.2, %v1589_v18  ;;  %v1603_v53 = vpop.f32.mrf.mxu0  ;;  %v1616_v9 = vpop.f32.mrf.mxu1  ;;  %2569 = vmatmul.bf16.vlgmr.msrb.gmra.mxu1 %v5053_v55  ;;  %v3614_v46 = vor.u32 %v4141_v6, %v3611_v10  ;;  %v3579_v6 = vld [vmem:[#allocation8 + $0x108] sm:$0xf0] }
 0x3fb   : > { %2643 = vmatpush.bf16.msra.mxu3 %v3542_v13  ;;  %2665 = vmatpush.bf16.msrb.mxu1 %v3702_v15  ;;  %v3830_v15 = vor.u32 %v4195_v22, %v3827_v62  ;;  %v3659_v53 = vld [vmem:[#allocation8 + $0x1a8] sm:$0xf0]  ;;  %v4139_v9 = vld [vmem:[#allocation8 + $0x134] sm:$0xf]  ;;  %v3587_v22 = vld [vmem:[#allocation8 + $0x118] sm:$0xf0] }
 0x3fc   : > { %v1740_v29 = vsel %vm1724_vm1, %v1589_v18, %v1732_v51  ;;  %2629 = vmatpush.bf16.msra.mxu2 %v3486_v56  ;;  %v4193_v18 = vld [vmem:[#allocation8 + $0x2e4] sm:$0xf]  ;;  %v3670_v56 = vor.u32 %v4155_v4, %v3667_v5  ;;  %v3795_v62 = vld [vmem:[#allocation8 + $0x2b8] sm:$0xf0] }
 0x3fd   : > { %v5056_v36 = vpack.c.bf16 %v1740_v29, %v1740_v29  ;;  %v4153_v51 = vld [vmem:[#allocation8 + $0x1a4] sm:$0xf]  ;;  %v3822_v32 = vor.u32 %v4193_v18, %v3819_v21  ;;  %v3779_v21 = vld [vmem:[#allocation8 + $0x298] sm:$0xf0] }
 0x3fe   : > { %v3662_v38 = vor.u32 %v4153_v51, %v3659_v53  ;;  %v4133_v5 = vld [vmem:[#allocation8 + $0x104] sm:$0xf] }
 0x3ff   : > { %v1577_v1 = vpop.f32.mrf.mxu2  ;;  %v1590_v2 = vpop.f32.mrf.mxu3  ;;  %2556 = vmatmul.bf16.vlgmr.msrb.gmra.mxu0 %v5056_v36  ;;  %2644 = vmatpush.bf16.msra.mxu3 %v3534_v28 }
 0x400   : > { %2630 = vmatpush.bf16.msra.mxu2 %v3478_v31  ;;  %2666 = vmatpush.bf16.msrb.mxu1 %v3694_v35  ;;  %v3603_v31 = vld [vmem:[#allocation8 + $0x138] sm:$0xf0]  ;;  %v4191_v35 = vld [vmem:[#allocation8 + $0x2d4] sm:$0xf] }
 0x401   : > { %2652 = vmatpush.bf16.msrb.mxu0 %v3638_v37  ;;  %v4177_v37 = vld [vmem:[#allocation8 + $0x264] sm:$0xf]  ;;  %v3606_v17 = vor.u32 %v4139_v9, %v3603_v31  ;;  %v4151_v1 = vld [vmem:[#allocation8 + $0x194] sm:$0xf]  ;;  %v3651_v2 = vld [vmem:[#allocation8 + $0x198] sm:$0xf0]  ;;  %v3814_v45 = vor.u32 %v4191_v35, %v3811_v33 }
 0x402   : > { %v3654_v54 = vor.u32 %v4151_v1, %v3651_v2  ;;  %v3955_v31 = vld [vmem:[#allocation8 + $0x3f8] sm:$0xf0]  ;;  %v4225_v2 = vld [vmem:[#allocation8 + $0x3e4] sm:$0xf] }
 0x403   : > { %2645 = vmatpush.bf16.msra.mxu3 %v3526_v40  ;;  %v4137_v40 = vld [vmem:[#allocation8 + $0x124] sm:$0xf] }
 0x404   : > { %2631 = vmatpush.bf16.msra.mxu2 %v3470_v42  ;;  %2667 = vmatpush.bf16.msrb.mxu1 %v3686_v47  ;;  %v3595_v42 = vld [vmem:[#allocation8 + $0x128] sm:$0xf0]  ;;  %v3758_v47 = vor.u32 %v4177_v37, %v3755_v16 }
 0x405   : > { %v1653_v52 = vpop.f32.mrf.mxu0  ;;  %v1666_v59 = vpop.f32.mrf.mxu1  ;;  %2653 = vmatpush.bf16.msrb.mxu0 %v3630_v49  ;;  %v3803_v49 = vld [vmem:[#allocation8 + $0x2c8] sm:$0xf0]  ;;  %v3598_v26 = vor.u32 %v4137_v40, %v3595_v42  ;;  %v4165_v42 = vld [vmem:[#allocation8 + $0x204] sm:$0xf] }
 0x406   : > { %v1667_v61 = vadd.f32 %v1666_v59, %v1653_v52  ;;  %v3643_v52 = vld [vmem:[#allocation8 + $0x188] sm:$0xf0]  ;;  %v4135_v59 = vld [vmem:[#allocation8 + $0x114] sm:$0xf] }
 0x407   : > { %2646 = vmatpush.bf16.msra.mxu3 %v3518_v58  ;;  %v4149_v58 = vld [vmem:[#allocation8 + $0x184] sm:$0xf]  ;;  %v3590_v4 = vor.u32 %v4135_v59, %v3587_v22  ;;  %v3947_v40 = vld [vmem:[#allocation8 + $0x3e8] sm:$0xf0] }
 0x408   : > { %vm1727_vm2 = vcmp.ge.f32.partialorder %v1667_v61, 0.0  ;;  %v1735_v8 = vmul.f32 0.2, %v1667_v61  ;;  %2632 = vmatpush.bf16.msra.mxu2 %v3462_v60  ;;  %2668 = vmatpush.bf16.msrb.mxu1 %v3678_v25  ;;  %v1627_v13 = vpop.f32.mrf.mxu2  ;;  %v1640_v14 = vpop.f32.mrf.mxu3  ;;  %v3806_v60 = vor.u32 %v4189_v48, %v3803_v49  ;;  %v3750_v25 = vor.u32 %v4175_v50, %v3747_v57  ;;  %v4209_v22 = vld [vmem:[#allocation8 + $0x364] sm:$0xf] }
 0x409   : > { %2654 = vmatpush.bf16.msrb.mxu0 %v3622_v3  ;;  %v1641_v20 = vadd.f32 %v1640_v14, %v1627_v13  ;;  %v3646_v63 = vor.u32 %v4149_v58, %v3643_v52  ;;  %v3739_v3 = vld [vmem:[#allocation8 + $0x248] sm:$0xf0]  ;;  %v4171_v13 = vld [vmem:[#allocation8 + $0x234] sm:$0xf]  ;;  %v3731_v14 = vld [vmem:[#allocation8 + $0x238] sm:$0xf0]  ;;  %v3950_v50 = vor.u32 %v4225_v2, %v3947_v40 }
 0x40a   : > { %v1743_v12 = vsel %vm1727_vm2, %v1667_v61, %v1735_v8  ;;  %v4187_v61 = vld [vmem:[#allocation8 + $0x2b4] sm:$0xf]  ;;  %v3742_v10 = vor.u32 %v4173_v0, %v3739_v3  ;;  %v3939_v52 = vld [vmem:[#allocation8 + $0x3d8] sm:$0xf0]  ;;  %v4221_v0 = vld [vmem:[#allocation8 + $0x3c4] sm:$0xf] }
 0x40b   : > { %v5059_v19 = vpack.c.bf16 %v1743_v12, %v1743_v12  ;;  %vm1726_vm3 = vcmp.ge.f32.partialorder %v1641_v20, 0.0  ;;  %v1734_v27 = vmul.f32 0.2, %v1641_v20  ;;  %v3798_v8 = vor.u32 %v4187_v61, %v3795_v62  ;;  %v3787_v12 = vld [vmem:[#allocation8 + $0x2a8] sm:$0xf0] }
 0x40c   : > { %2633 = vmatpush.bf16.msra.mxu2 %v3454_v11  ;;  %2669 = vmatpush.bf16.msrb.mxu1 %v3670_v56  ;;  %v4185_v11 = vld [vmem:[#allocation8 + $0x2a4] sm:$0xf]  ;;  %v3734_v56 = vor.u32 %v4171_v13, %v3731_v14  ;;  %v4223_v58 = vld [vmem:[#allocation8 + $0x3d4] sm:$0xf]  ;;  %v3931_v3 = vld [vmem:[#allocation8 + $0x3c8] sm:$0xf0] }
 0x40d   : > { %v1655_v28 = vpop.f32.mrf.mxu0  ;;  %v1668_v29 = vpop.f32.mrf.mxu1  ;;  %2595 = vmatmul.bf16.vlgmr.msrb.gmra.mxu3 %v5059_v19  ;;  %v1742_v34 = vsel %vm1726_vm3, %v1641_v20, %v1734_v27  ;;  %2655 = vmatpush.bf16.msrb.mxu0 %v3614_v46  ;;  %v3790_v18 = vor.u32 %v4185_v11, %v3787_v12  ;;  %v4183_v20 = vld [vmem:[#allocation8 + $0x294] sm:$0xf]  ;;  %v3726_v27 = vor.u32 %v4169_v23, %v3723_v24  ;;  %v4205_v11 = vld [vmem:[#allocation8 + $0x344] sm:$0xf]  ;;  %v3867_v12 = vld [vmem:[#allocation8 + $0x348] sm:$0xf0] }
 0x40e   : > { %2691 = vmatpush.bf16.msrb.mxu3 %v3830_v15  ;;  %v5062_v39 = vpack.c.bf16 %v1742_v34, %v1742_v34  ;;  %v3582_v15 = vor.u32 %v4133_v5, %v3579_v6  ;;  %v3782_v53 = vor.u32 %v4183_v20, %v3779_v21  ;;  %v4181_v28 = vld [vmem:[#allocation8 + $0x284] sm:$0xf]  ;;  %v4227_v29 = vld [vmem:[#allocation8 + $0x3f4] sm:$0xf]  ;;  %v3715_v34 = vld [vmem:[#allocation8 + $0x218] sm:$0xf0]  ;;  %v3942_v62 = vor.u32 %v4223_v58, %v3939_v52 }
 0x40f   : > { %v3958_v16 = vor.u32 %v4227_v29, %v3955_v31  ;;  %v3875_v5 = vld [vmem:[#allocation8 + $0x358] sm:$0xf0]  ;;  %v3934_v6 = vor.u32 %v4221_v0, %v3931_v3  ;;  %v3870_v14 = vor.u32 %v4205_v11, %v3867_v12  ;;  %v4215_v23 = vld [vmem:[#allocation8 + $0x394] sm:$0xf] }
 0x410   : > { %v1629_v43 = vpop.f32.mrf.mxu2  ;;  %v1642_v44 = vpop.f32.mrf.mxu3  ;;  %2582 = vmatmul.bf16.vlgmr.msrb.gmra.mxu2 %v5062_v39  ;;  %2670 = vmatpush.bf16.msrb.mxu1 %v3662_v38  ;;  %v3859_v20 = vld [vmem:[#allocation8 + $0x338] sm:$0xf0] }
 0x411   : > { %2678 = vmatpush.bf16.msrb.mxu2 %v3766_v30  ;;  %2656 = vmatpush.bf16.msrb.mxu0 %v3606_v17  ;;  %v3707_v43 = vld [vmem:[#allocation8 + $0x208] sm:$0xf0]  ;;  %v4211_v44 = vld [vmem:[#allocation8 + $0x374] sm:$0xf]  ;;  %v3907_v24 = vld [vmem:[#allocation8 + $0x398] sm:$0xf0] }
 0x412   : > { %2692 = vmatpush.bf16.msrb.mxu3 %v3822_v32  ;;  %v4167_v32 = vld [vmem:[#allocation8 + $0x214] sm:$0xf]  ;;  %v3710_v57 = vor.u32 %v4165_v42, %v3707_v43  ;;  %v3843_v29 = vld [vmem:[#allocation8 + $0x318] sm:$0xf0] }
 0x414   : > { %2671 = vmatpush.bf16.msrb.mxu1 %v3654_v54 }
 0x415   : > { %2679 = vmatpush.bf16.msrb.mxu2 %v3758_v47  ;;  %2657 = vmatpush.bf16.msrb.mxu0 %v3598_v26 }
 0x416   : > { %2693 = vmatpush.bf16.msrb.mxu3 %v3814_v45  ;;  %v3891_v45 = vld [vmem:[#allocation8 + $0x378] sm:$0xf0] }
 0x417   : > { %v3894_v26 = vor.u32 %v4211_v44, %v3891_v45 }
 0x418   : > { %2672 = vmatpush.bf16.msrb.mxu1 %v3646_v63 }
 0x419   : > { %2680 = vmatpush.bf16.msrb.mxu2 %v3750_v25  ;;  %2658 = vmatpush.bf16.msrb.mxu0 %v3590_v4  ;;  %v4207_v4 = vld [vmem:[#allocation8 + $0x354] sm:$0xf] }
 0x41a   : > { %2694 = vmatpush.bf16.msrb.mxu3 %v3806_v60  ;;  %v3883_v60 = vld [vmem:[#allocation8 + $0x368] sm:$0xf0] }
 0x41b   : > { %v3886_v63 = vor.u32 %v4209_v22, %v3883_v60 }
 0x41d   : > { %2647 = vmatmul.bf16.vlgmr.msra.gmra.mxu3 %v5047_v7  ;;  %2681 = vmatpush.bf16.msrb.mxu2 %v3742_v10  ;;  %v3771_v7 = vld [vmem:[#allocation8 + $0x288] sm:$0xf0]  ;;  %v3923_v10 = vld [vmem:[#allocation8 + $0x3b8] sm:$0xf0] }
 0x41e   : > { %2695 = vmatpush.bf16.msrb.mxu3 %v3798_v8  ;;  %2659 = vmatpush.bf16.msrb.mxu0 %v3582_v15  ;;  %v3774_v35 = vor.u32 %v4181_v28, %v3771_v7  ;;  %v4219_v8 = vld [vmem:[#allocation8 + $0x3b4] sm:$0xf]  ;;  %v4217_v15 = vld [vmem:[#allocation8 + $0x3a4] sm:$0xf]  ;;  %v3899_v28 = vld [vmem:[#allocation8 + $0x388] sm:$0xf0] }
 0x41f   : > { %v3926_v13 = vor.u32 %v4219_v8, %v3923_v10  ;;  %v4199_v7 = vld [vmem:[#allocation8 + $0x314] sm:$0xf] }
 0x420   : > { %2634 = vmatmul.bf16.vlgmr.msra.gmra.mxu2 %v5050_v41  ;;  %v3718_v41 = vor.u32 %v4167_v32, %v3715_v34  ;;  %v3846_v31 = vor.u32 %v4199_v7, %v3843_v29  ;;  %v4197_v32 = vld [vmem:[#allocation8 + $0x304] sm:$0xf]  ;;  %v3835_v34 = vld [vmem:[#allocation8 + $0x308] sm:$0xf0] }
 0x421   : > { %2682 = vmatpush.bf16.msrb.mxu2 %v3734_v56  ;;  %v4203_v56 = vld [vmem:[#allocation8 + $0x334] sm:$0xf] }
 0x422   : > { %2696 = vmatpush.bf16.msrb.mxu3 %v3790_v18  ;;  %v3915_v18 = vld [vmem:[#allocation8 + $0x3a8] sm:$0xf0] }
 0x423   : > { %v3918_v21 = vor.u32 %v4217_v15, %v3915_v18 }
 0x424   : > { %v1705_v46 = vpop.f32.mrf.mxu0  ;;  %v1718_v51 = vpop.f32.mrf.mxu1 }
 0x425   : > { %v1719_v9 = vadd.f32 %v1718_v51, %v1705_v46  ;;  %2683 = vmatpush.bf16.msrb.mxu2 %v3726_v27  ;;  %v4201_v46 = vld [vmem:[#allocation8 + $0x324] sm:$0xf]  ;;  %v3851_v51 = vld [vmem:[#allocation8 + $0x328] sm:$0xf0] }
 0x426   : > { %2697 = vmatpush.bf16.msrb.mxu3 %v3782_v53  ;;  %v3910_v53 = vor.u32 %v4215_v23, %v3907_v24  ;;  %v4213_v27 = vld [vmem:[#allocation8 + $0x384] sm:$0xf] }
 0x427   : > { %vm1729_vm4 = vcmp.ge.f32.partialorder %v1719_v9, 0.0  ;;  %v1737_v30 = vmul.f32 0.2, %v1719_v9 }
 0x428   : > { %v1679_v37 = vpop.f32.mrf.mxu2  ;;  %v1692_v38 = vpop.f32.mrf.mxu3 }
 0x429   : > { %v1745_v33 = vsel %vm1729_vm4, %v1719_v9, %v1737_v30  ;;  %v1693_v1 = vadd.f32 %v1692_v38, %v1679_v37  ;;  %2684 = vmatpush.bf16.msrb.mxu2 %v3718_v41  ;;  %v3854_v9 = vor.u32 %v4201_v46, %v3851_v51  ;;  %v3838_v30 = vor.u32 %v4197_v32, %v3835_v34 }
 0x42a   : > { %v5067_v17 = vpack.c.bf16 %v1745_v33, %v1745_v33  ;;  %2698 = vmatpush.bf16.msrb.mxu3 %v3774_v35 }
 0x42b   : > { %vm1728_vm5 = vcmp.ge.f32.partialorder %v1693_v1, 0.0  ;;  %v1736_v47 = vmul.f32 0.2, %v1693_v1 }
 0x42c   : > { %v1707_v48 = vpop.f32.mrf.mxu0  ;;  %v1720_v49 = vpop.f32.mrf.mxu1  ;;  %2621 = vmatmul.bf16.vlgmr.msra.gmra.mxu1 %v5067_v17 }
 0x42d   : > { %2717 = vmatpush.bf16.msra.mxu1 %v3958_v16  ;;  %v1744_v54 = vsel %vm1728_vm5, %v1693_v1, %v1736_v47  ;;  %2699 = vmatmul.bf16.vlgmr.msrb.gmra.mxu3 %v5059_v19  ;;  %v3878_v19 = vor.u32 %v4207_v4, %v3875_v5 }
 0x42e   : > { %v1752_v59 = vpack.c.bf16 %v1744_v54, %v1744_v54  ;;  %2685 = vmatpush.bf16.msrb.mxu2 %v3710_v57 }
 0x430   : > { %v1681_v25 = vpop.f32.mrf.mxu2  ;;  %v1694_v61 = vpop.f32.mrf.mxu3  ;;  %2608 = vmatmul.bf16.vlgmr.msra.gmra.mxu0 %v1752_v59 }
 0x431   : > { %2718 = vmatpush.bf16.msra.mxu1 %v3950_v50  ;;  %2704 = vmatpush.bf16.msra.mxu0 %v3894_v26 }
 0x432   : > { %2686 = vmatmul.bf16.vlgmr.msrb.gmra.mxu2 %v5062_v39  ;;  %v3862_v39 = vor.u32 %v4203_v56, %v3859_v20 }
 0x435   : > { %2719 = vmatpush.bf16.msra.mxu1 %v3942_v62  ;;  %2705 = vmatpush.bf16.msra.mxu0 %v3886_v63 }
 0x439   : > { %2720 = vmatpush.bf16.msra.mxu1 %v3934_v6  ;;  %2706 = vmatpush.bf16.msra.mxu0 %v3878_v19 }
 0x43c   : > { %2673 = vmatmul.bf16.vlgmr.msrb.gmra.mxu1 %v5053_v55  ;;  %v3902_v55 = vor.u32 %v4213_v27, %v3899_v28 }
 0x43d   : > { %2721 = vmatpush.bf16.msra.mxu1 %v3926_v13  ;;  %2707 = vmatpush.bf16.msra.mxu0 %v3870_v14 }
 0x440   : > { %2660 = vmatmul.bf16.vlgmr.msrb.gmra.mxu0 %v5056_v36 }
 0x441   : > { %2722 = vmatpush.bf16.msra.mxu1 %v3918_v21  ;;  %2708 = vmatpush.bf16.msra.mxu0 %v3862_v39 }
 0x445   : > { %2723 = vmatpush.bf16.msra.mxu1 %v3910_v53  ;;  %2709 = vmatpush.bf16.msra.mxu0 %v3854_v9 }
 0x449   : > { %2724 = vmatpush.bf16.msra.mxu1 %v3902_v55  ;;  %2710 = vmatpush.bf16.msra.mxu0 %v3846_v31 }
 0x44c   : > { %2725 = vmatmul.bf16.vlgmr.msra.gmra.mxu1 %v5067_v17 }
 0x44d   : > { %2711 = vmatpush.bf16.msra.mxu0 %v3838_v30 }
 0x450   : > { %2712 = vmatmul.bf16.vlgmr.msra.gmra.mxu0 %v1752_v59 }
 0x46d   : > { %v2544_v36 = vpop.f32.mrf.mxu3 }
 0x472   : > { %v2531_v35 = vpop.f32.mrf.mxu2 }
 0x473   : > { %v2545_v44 = vadd.f32 %v2544_v36, %v2531_v35 }
 0x475   : > { %v2546_v33 = vpop.f32.mrf.mxu3 }
 0x477   : > { %v2570_v37 = vpop.f32.mrf.mxu1 }
 0x47a   : > { %v2533_v38 = vpop.f32.mrf.mxu2 }
 0x47c   : > { %v2557_v16 = vpop.f32.mrf.mxu0 }
 0x47d   : > { %v2558_v47 = vadd.f32 %v2557_v16, %v2545_v44 }
 0x47f   : > { %v2572_v41 = vpop.f32.mrf.mxu1  ;;  %v2571_v48 = vadd.f32 %v2570_v37, %v2558_v47 }
 0x484   : > { %v2559_v1 = vpop.f32.mrf.mxu0 }
 0x490   : > { %v2596_v2 = vpop.f32.mrf.mxu3 }
 0x493   : > { %v2583_v40 = vpop.f32.mrf.mxu2 }
 0x494   : > { %v2584_v49 = vadd.f32 %v2583_v40, %v2571_v48 }
 0x496   : > { %v2597_v57 = vadd.f32 %v2596_v2, %v2584_v49 }
 0x498   : > { %v2598_v42 = vpop.f32.mrf.mxu3 }
 0x49b   : > { %v2585_v43 = vpop.f32.mrf.mxu2 }
 0x4a0   : > { %v2648_v45 = vpop.f32.mrf.mxu3 }
 0x4a3   : > { %v2635_v17 = vpop.f32.mrf.mxu2 }
 0x4a4   : > { %v2649_v3 = vadd.f32 %v2648_v45, %v2635_v17 }
 0x4a8   : > { %v2650_v54 = vpop.f32.mrf.mxu3 }
 0x4a9   : > { %v2622_v50 = vpop.f32.mrf.mxu1 }
 0x4ab   : > { %v2637_v52 = vpop.f32.mrf.mxu2 }
 0x4ad   : > { %v2609_v26 = vpop.f32.mrf.mxu0 }
 0x4ae   : > { %v2610_v58 = vadd.f32 %v2609_v26, %v2597_v57 }
 0x4b0   : > { %v2623_v59 = vadd.f32 %v2622_v50, %v2610_v58  ;;  %v2700_v60 = vpop.f32.mrf.mxu3 }
 0x4b1   : > { %v2624_v22 = vpop.f32.mrf.mxu1 }
 0x4b2   : > { %2730 = vst [vmem:[%s4862_s16] sm:$0xff] %v2623_v59 }
 0x4b5   : > { %v2611_v25 = vpop.f32.mrf.mxu0  ;;  %v2687_v61 = vpop.f32.mrf.mxu2 }
 0x4b8   : > { %v2702_v63 = vpop.f32.mrf.mxu3 }
 0x4b9   : > { %v2674_v62 = vpop.f32.mrf.mxu1 }
 0x4bd   : > { %v2661_v0 = vpop.f32.mrf.mxu0  ;;  %v2689_v4 = vpop.f32.mrf.mxu2 }
 0x4be   : > { %v2662_v5 = vadd.f32 %v2661_v0, %v2649_v3 }
 0x4c0   : > { %v2675_v19 = vadd.f32 %v2674_v62, %v2662_v5 }
 0x4c1   : > { %v2676_v6 = vpop.f32.mrf.mxu1 }
 0x4c2   : > { %v2688_v11 = vadd.f32 %v2687_v61, %v2675_v19 }
 0x4c4   : > { %v2701_v12 = vadd.f32 %v2700_v60, %v2688_v11 }
 0x4c5   : > { %v2663_v8 = vpop.f32.mrf.mxu0 }
 0x4c9   : > { %v2726_v10 = vpop.f32.mrf.mxu1 }
 0x4cd   : > { %v2713_v13 = vpop.f32.mrf.mxu0 }
 0x4ce   : > { %v2714_v14 = vadd.f32 %v2713_v13, %v2701_v12 }
 0x4d0   : > { %v2727_v15 = vadd.f32 %v2726_v10, %v2714_v14 }
 0x4d1   : > { %v2728_v18 = vpop.f32.mrf.mxu1 }
 0x4d2   : > { %2731 = vst [vmem:[%s4862_s16 + $0x8] sm:$0xff] %v2727_v15 }
 0x4d3   : > { %4547 = shalt.err (!%p4544_p10)
}
 0x4d4   : > { %4242 = dma.vmem_to_hbm [thread:$0]  (%p4767_p6), %s2749_s23, 256, %s2751_s12, %s2733_s30  }
 0x4d5   : > { %v2715_v56 = vpop.f32.mrf.mxu0 }
 0x4d6 PF: > { %s5173_s2 = sld [smem:[#allocation13_spill]]  ;;  %p4264_p11 = scmp.ge.s32.totalorder %s4646_s11, 2 }
 0x4d8   : > { %p4256_p12 = pnand %p4264_p11, %p4772_p8 }
 0x4da   : > { %p4257_p9 = pneg %p4256_p12 }
 0x4dc   : > { %s2762_s13 = sand.u32 1, %s5173_s2  }
 0x4dd   : > { %s2763_s20 = scalar_lea.sflag [#allocation5], %s2762_s13 }
 0x4de   : > { %4601 = dma.done.wait (%p4257_p9), %s2763_s20, 256  }
 0x4df   : > { %4603 = vsyncadd (%p4257_p9), %s2763_s20, 4294967040  ;;  %s24_s11 = sadd.s32 1, %s4646_s11   ;;  %s5175_s30 = sld [smem:[#allocation14_spill]] }
 0x4e0   : > { %p21_p13 = scmp.ge.s32.totalorder %s24_s11, 6   ;;  %s5176_s9 = sld [smem:[#allocation17_spill]] }
 0x4e1   : > { %s5177_s7 = sld [smem:[#allocation18_spill]]  ;;  %s5178_s24 = smov %s4610_s25 }
 0x4e2   : > { %s5179_s25 = smov %s4614_s26  ;;  %s5180_s26 = smov %s4820_s19 }
 0x4e3   : > { %s5181_s27 = smov %s4622_s28  ;;  %s5182_s28 = smov %s4626_s29 }
 0x4e4   : > { %s5183_s29 = smov %s4817_s18  ;;  %s5184_s8 = smov %s4642_s10 }
 0x4e5   :  { %23 = sbr.rel (!%p21_p13) target bundleno = 16 (0x10), region = 114 }
 0x4e7   : > { %s5185_s10 = smov %s5177_s7 }
 0x4ea   :  { %2769 = vsyncpa [#allocation4], 1 }
 0x4eb   :  { %2771 = vsyncpa [#allocation4 + $0x1], 1 }
 0x4ec   :  { %2772 = vsyncpa [#allocation7], 1 }
 0x4ed   :  { %2773 = vsyncpa [#allocation5], 1 }
 0x4ee   :  { %2775 = vsyncpa [#allocation5 + $0x1], 1 }

</bundles_post_ra>
